<compile_context>
chip_gen: v7x
topology: tpu7x:2x2x1
jax: 0.10.0
libtpu: 0.0.40
codegen_flags: <defaults>
</compile_context>

<pallas_src>
import functools

import jax
import jax.numpy as jnp
from jax.experimental import pallas as pl
from jax.experimental.pallas import tpu as pltpu


# --------------------------------------------------------------------------- #
# In-kernel helpers
# --------------------------------------------------------------------------- #
def _conv3x3_planes(z_planes, zbuf_ref, cm_left, cm_right, w_ref, b_ref,
                    *, cin, cout, H, W, pad):
    """3x3 'SAME' conv on per-channel planes.

    z_planes : list of `cin` float32 arrays of shape (NB, 1, L), L = H*W, with the
               spatial dims flattened into the lane axis.
    zbuf_ref : VMEM scratch (cin, NB, 1, L + 2*pad) whose pad regions are zero.
    cm_left / cm_right : (1, L) float32 lane masks for the kx = -1 / +1 taps.
    w_ref    : SMEM 1-D float32, HWIO weights flattened (((ky*3+kx)*cin+ci)*cout+co).
    b_ref    : SMEM 1-D float32 bias (cout,).
    Returns  : list of `cout` float32 (NB, 1, L) planes = conv(z) + bias.
    """
    NB = z_planes[0].shape[0]
    L = H * W

    # Stage the planes into the zero-padded scratch (lane-aligned store at `pad`).
    for ci in range(cin):
        zbuf_ref[ci, :, :, pad:pad + L] = z_planes[ci]

    acc = [jnp.zeros((NB, 1, L), jnp.float32) for _ in range(cout)]
    t = 0
    for dy in (-1, 0, 1):
        for dx in (-1, 0, 1):
            off = dy * W + dx
            start = pad + off
            for ci in range(cin):
                # Shifted, zero-extended plane (rows out of range read the zero pad).
                s = zbuf_ref[ci, :, :, start:start + L]
                if dx == -1:
                    s = s * cm_left     # mask columns that wrapped from the previous row
                elif dx == 1:
                    s = s * cm_right    # mask columns that wrapped from the next row
                for co in range(cout):
                    w = w_ref[(t * cin + ci) * cout + co]
                    acc[co] = acc[co] + w * s
            t += 1
    return [acc[co] + b_ref[co] for co in range(cout)]


def _assemble_channels(planes, C):
    """Stack C (NB, 1, L) planes into a single (NB, C, L) array using only
    broadcasts + selects (no sublane concat / reshape)."""
    NB, _, L = planes[0].shape
    full_shape = (NB, C, L)
    cidx = jax.lax.broadcasted_iota(jnp.int32, full_shape, 1)
    out = jnp.broadcast_to(planes[0], full_shape)
    for c in range(1, C):
        out = jnp.where(cidx == c, jnp.broadcast_to(planes[c], full_shape), out)
    return out


# --------------------------------------------------------------------------- #
# Fused kernels (one pallas_call per forward)
# --------------------------------------------------------------------------- #
def _coupled_kernel(x_ref, cm_ref, w0_ref, b0_ref, w1_ref, b1_ref, o_ref, zbuf_ref,
                    *, H, W, ch, pad):
    # x_ref / o_ref : (NB, 2*ch, H*W)   zbuf_ref: (ch, NB, 1, H*W + 2*pad)
    C = 2 * ch
    zbuf_ref[...] = jnp.zeros_like(zbuf_ref)
    cm = cm_ref[...]
    cm_left, cm_right = cm[0:1, :], cm[1:2, :]

    y1 = [x_ref[:, c:c + 1, :].astype(jnp.float32) for c in range(ch)]
    y2 = [x_ref[:, c:c + 1, :].astype(jnp.float32) for c in range(ch, C)]

    # x2 = y2 - block[1](y1)
    c1 = _conv3x3_planes(y1, zbuf_ref, cm_left, cm_right, w1_ref, b1_ref,
                         cin=ch, cout=ch, H=H, W=W, pad=pad)
    x2 = [y2[c] - c1[c] for c in range(ch)]

    # x1 = y1 - block[0](x2)
    c0 = _conv3x3_planes(x2, zbuf_ref, cm_left, cm_right, w0_ref, b0_ref,
                         cin=ch, cout=ch, H=H, W=W, pad=pad)
    x1 = [y1[c] - c0[c] for c in range(ch)]

    out = _assemble_channels(x1 + x2, C)           # cat([x1, x2], dim=channel)
    o_ref[...] = out.astype(o_ref.dtype)


def _single_kernel(x_ref, cm_ref, w_ref, b_ref, o_ref, zbuf_ref,
                   *, H, W, C, order, pad):
    # x_ref / o_ref : (NB, C, H*W)   zbuf_ref: (C, NB, 1, H*W + 2*pad)
    zbuf_ref[...] = jnp.zeros_like(zbuf_ref)
    cm = cm_ref[...]
    cm_left, cm_right = cm[0:1, :], cm[1:2, :]

    x = [x_ref[:, c:c + 1, :].astype(jnp.float32) for c in range(C)]
    z = x
    for _ in range(order):                         # z = x - block[0](z)
        y = _conv3x3_planes(z, zbuf_ref, cm_left, cm_right, w_ref, b_ref,
                            cin=C, cout=C, H=H, W=W, pad=pad)
        z = [x[c] - y[c] for c in range(C)]

    out = _assemble_channels(z, C)
    o_ref[...] = out.astype(o_ref.dtype)


# --------------------------------------------------------------------------- #
# Wrapper (mirrors PyTorch backward_block_model.forward, NCHW in / NCHW out)
# --------------------------------------------------------------------------- #
def backward_block_model_forward(x_nchw, blocks, order=1):
    """blocks: list of (w_hwio, bias) tuples, each a Conv2d(C_in, C_in, 3, padding=1)."""
    N, C, H, W = x_nchw.shape
    L = H * W
    pad = max(128, ((W + 1 + 127) // 128) * 128)   # lane-aligned halo >= W+1

    # Free (contiguous) reshape: lane-dense last dim, no HBM transpose / pad.
    x_flat = x_nchw.reshape(N, C, L)

    # Column-validity masks for the kx = -1 / +1 taps.
    w_idx = jnp.arange(L, dtype=jnp.int32) % W
    cmask = jnp.stack([(w_idx >= 1).astype(jnp.float32),
                       (w_idx <= W - 2).astype(jnp.float32)], axis=0)   # (2, L)

    # Whole batch in one grid step at small sizes; shrink the batch tile for
    # large inputs so the parallel grid axis can feed both v7x TensorCores.
    itemsize = jnp.dtype(x_nchw.dtype).itemsize
    nb = N if N * C * L * itemsize <= 2 * 1024 * 1024 else 1
    while N % nb:
        nb -= 1
    grid = (N // nb,)
    cparams = pltpu.CompilerParams(dimension_semantics=("parallel",))

    data_spec = pl.BlockSpec((nb, C, L), lambda n: (n, 0, 0))
    mask_spec = pl.BlockSpec((2, L), lambda n: (0, 0))
    smem_spec = pl.BlockSpec(memory_space=pltpu.MemorySpace.SMEM)

    if len(blocks) == 1:
        w, b = blocks[0]
        kernel = functools.partial(_single_kernel, H=H, W=W, C=C, order=order, pad=pad)
        out_flat = pl.pallas_call(
            kernel,
            out_shape=jax.ShapeDtypeStruct((N, C, L), x_nchw.dtype),
            grid=grid,
            in_specs=[data_spec, mask_spec, smem_spec, smem_spec],
            out_specs=data_spec,
            scratch_shapes=[pltpu.VMEM((C, nb, 1, L + 2 * pad), jnp.float32)],
            compiler_params=cparams,
        )(x_flat, cmask,
          w.reshape(-1).astype(jnp.float32), b.astype(jnp.float32))
    else:
        assert C % 2 == 0, "coupled branch needs an even channel count"
        ch = C // 2
        (w0, b0), (w1, b1) = blocks
        kernel = functools.partial(_coupled_kernel, H=H, W=W, ch=ch, pad=pad)
        out_flat = pl.pallas_call(
            kernel,
            out_shape=jax.ShapeDtypeStruct((N, C, L), x_nchw.dtype),
            grid=grid,
            in_specs=[data_spec, mask_spec, smem_spec, smem_spec, smem_spec, smem_spec],
            out_specs=data_spec,
            scratch_shapes=[pltpu.VMEM((ch, nb, 1, L + 2 * pad), jnp.float32)],
            compiler_params=cparams,
        )(x_flat, cmask,
          w0.reshape(-1).astype(jnp.float32), b0.astype(jnp.float32),
          w1.reshape(-1).astype(jnp.float32), b1.astype(jnp.float32))

    return out_flat.reshape(N, C, H, W)


# ----------------------------- pure-JAX reference --------------------------- #
def _conv_ref(z_nchw, w_hwio, bias):
    out = jax.lax.conv_general_dilated(
        z_nchw, w_hwio, window_strides=(1, 1), padding='SAME',
        dimension_numbers=('NCHW', 'HWIO', 'NCHW'))
    return out + bias.reshape(1, -1, 1, 1)


def _forward_ref(x_nchw, blocks, order=1):
    if len(blocks) == 1:
        w, b = blocks[0]
        z = x_nchw
        for _ in range(order):
            z = x_nchw - _conv_ref(z, w, b)
        return z
    C = x_nchw.shape[1]
    y1, y2 = x_nchw[:, :C // 2], x_nchw[:, C // 2:]
    x2 = y2 - _conv_ref(y1, *blocks[1])
    x1 = y1 - _conv_ref(x2, *blocks[0])
    return jnp.concatenate([x1, x2], axis=1)


if __name__ == "__main__":
    key = jax.random.PRNGKey(0)
    kx, kw0, kb0, kw1, kb1, kwf, kbf = jax.random.split(key, 7)

    N, C, H, W = 2, 4, 16, 16          # NCHW input, channels split in half
    Ch = C // 2

    x = jax.random.normal(kx, (N, C, H, W), jnp.float32)

    # Two-block (coupling) case: each block is Conv2d(Ch, Ch, 3, padding=1).
    blocks2 = [
        (0.1 * jax.random.normal(kw0, (3, 3, Ch, Ch), jnp.float32),
         0.1 * jax.random.normal(kb0, (Ch,), jnp.float32)),
        (0.1 * jax.random.normal(kw1, (3, 3, Ch, Ch), jnp.float32),
         0.1 * jax.random.normal(kb1, (Ch,), jnp.float32)),
    ]
    out2 = backward_block_model_forward(x, blocks2)
    jax.block_until_ready(out2)
    ref2 = _forward_ref(x, blocks2)
    assert out2.shape == x.shape
    assert jnp.allclose(out2, ref2, atol=1e-4, rtol=1e-4), \
        float(jnp.max(jnp.abs(out2 - ref2)))

    # Single-block case with order=2: block is Conv2d(C, C, 3, padding=1).
    blocks1 = [
        (0.1 * jax.random.normal(kwf, (3, 3, C, C), jnp.float32),
         0.1 * jax.random.normal(kbf, (C,), jnp.float32)),
    ]
    out1 = backward_block_model_forward(x, blocks1, order=2)
    jax.block_until_ready(out1)
    ref1 = _forward_ref(x, blocks1, order=2)
    assert out1.shape == x.shape
    assert jnp.allclose(out1, ref1, atol=1e-4, rtol=1e-4), \
        float(jnp.max(jnp.abs(out1 - ref1)))

    print("KERNEL_OK")
</pallas_src>

<mosaic_0001>
module attributes {stable_mosaic.version = 11 : i64} {
  func.func @_coupled_kernel(%arg0: i32, %arg1: memref<2x4x256xf32, #tpu.memory_space<vmem>>, %arg2: memref<2x256xf32, #tpu.memory_space<vmem>>, %arg3: memref<36xf32, #tpu.memory_space<smem>>, %arg4: memref<2xf32, #tpu.memory_space<smem>>, %arg5: memref<36xf32, #tpu.memory_space<smem>>, %arg6: memref<2xf32, #tpu.memory_space<smem>>, %arg7: memref<2x4x256xf32, #tpu.memory_space<vmem>>, %arg8: memref<2x2x1x512xf32, #tpu.memory_space<vmem>>) attributes {dimension_semantics = [#tpu.dimension_semantics<parallel>], iteration_bounds = array<i64: 1>, scalar_prefetch = 0 : i64, scratch_operands = 1 : i64, tpu.core_type = #tpu.core_type<tc>, window_params = [{transform_indices = @transform_0, window_bounds = array<i64: 2, 4, 256>}, {pipeline_mode = #tpu.pipeline_mode<synchronous>, transform_indices = @transform_1, window_bounds = array<i64: 2, 256>}, {transform_indices = @transform_2, window_bounds = array<i64: 36>}, {transform_indices = @transform_3, window_bounds = array<i64: 2>}, {transform_indices = @transform_4, window_bounds = array<i64: 36>}, {transform_indices = @transform_5, window_bounds = array<i64: 2>}, {transform_indices = @transform_6, window_bounds = array<i64: 2, 4, 256>}]} {
    %cst = arith.constant 0.000000e+00 : f32
    %0 = vector.broadcast %cst : f32 to vector<2x2x1x512xf32>
    %c0 = arith.constant 0 : index
    %c0_0 = arith.constant 0 : index
    %c0_1 = arith.constant 0 : index
    %c0_2 = arith.constant 0 : index
    %1 = vector.load %arg8[%c0, %c0_0, %c0_1, %c0_2] : memref<2x2x1x512xf32, #tpu.memory_space<vmem>>, vector<2x2x1x512xf32>
    tpu.vector_store %arg8[%c0, %c0_0, %c0_1, %c0_2], %0 {strides = array<i32>} : memref<2x2x1x512xf32, #tpu.memory_space<vmem>>, vector<2x2x1x512xf32>,
    %c0_3 = arith.constant 0 : index
    %c0_4 = arith.constant 0 : index
    %2 = vector.load %arg2[%c0_3, %c0_4] : memref<2x256xf32, #tpu.memory_space<vmem>>, vector<2x256xf32>
    %3 = vector.extract_strided_slice %2 {offsets = [0, 0], sizes = [1, 256], strides = [1, 1]} : vector<2x256xf32> to vector<1x256xf32>
    %4 = vector.extract_strided_slice %2 {offsets = [1, 0], sizes = [1, 256], strides = [1, 1]} : vector<2x256xf32> to vector<1x256xf32>
    %c0_5 = arith.constant 0 : index
    %c0_6 = arith.constant 0 : index
    %c0_7 = arith.constant 0 : index
    %5 = vector.load %arg1[%c0_5, %c0_6, %c0_7] : memref<2x4x256xf32, #tpu.memory_space<vmem>>, vector<2x1x256xf32>
    %c0_8 = arith.constant 0 : index
    %c1 = arith.constant 1 : index
    %c0_9 = arith.constant 0 : index
    %6 = vector.load %arg1[%c0_8, %c1, %c0_9] : memref<2x4x256xf32, #tpu.memory_space<vmem>>, vector<2x1x256xf32>
    %c0_10 = arith.constant 0 : index
    %c2 = arith.constant 2 : index
    %c0_11 = arith.constant 0 : index
    %7 = vector.load %arg1[%c0_10, %c2, %c0_11] : memref<2x4x256xf32, #tpu.memory_space<vmem>>, vector<2x1x256xf32>
    %c0_12 = arith.constant 0 : index
    %c3 = arith.constant 3 : index
    %c0_13 = arith.constant 0 : index
    %8 = vector.load %arg1[%c0_12, %c3, %c0_13] : memref<2x4x256xf32, #tpu.memory_space<vmem>>, vector<2x1x256xf32>
    %c0_14 = arith.constant 0 : index
    %c0_15 = arith.constant 0 : index
    %c0_16 = arith.constant 0 : index
    %c128 = arith.constant 128 : index
    %9 = vector.load %arg8[%c0_14, %c0_15, %c0_16, %c128] : memref<2x2x1x512xf32, #tpu.memory_space<vmem>>, vector<1x2x1x256xf32>
    %10 = vector.shape_cast %9 : vector<1x2x1x256xf32> to vector<2x1x256xf32>
    %11 = vector.shape_cast %5 : vector<2x1x256xf32> to vector<1x2x1x256xf32>
    tpu.vector_store %arg8[%c0_14, %c0_15, %c0_16, %c128], %11 {strides = array<i32>} : memref<2x2x1x512xf32, #tpu.memory_space<vmem>>, vector<1x2x1x256xf32>,
    %c1_17 = arith.constant 1 : index
    %c0_18 = arith.constant 0 : index
    %c0_19 = arith.constant 0 : index
    %c128_20 = arith.constant 128 : index
    %12 = vector.load %arg8[%c1_17, %c0_18, %c0_19, %c128_20] : memref<2x2x1x512xf32, #tpu.memory_space<vmem>>, vector<1x2x1x256xf32>
    %13 = vector.shape_cast %12 : vector<1x2x1x256xf32> to vector<2x1x256xf32>
    %14 = vector.shape_cast %6 : vector<2x1x256xf32> to vector<1x2x1x256xf32>
    tpu.vector_store %arg8[%c1_17, %c0_18, %c0_19, %c128_20], %14 {strides = array<i32>} : memref<2x2x1x512xf32, #tpu.memory_space<vmem>>, vector<1x2x1x256xf32>,
    %cst_21 = arith.constant 0.000000e+00 : f32
    %15 = vector.broadcast %cst_21 : f32 to vector<2x1x256xf32>
    %cst_22 = arith.constant 0.000000e+00 : f32
    %16 = vector.broadcast %cst_22 : f32 to vector<2x1x256xf32>
    %c0_23 = arith.constant 0 : index
    %c0_24 = arith.constant 0 : index
    %c0_25 = arith.constant 0 : index
    %c111 = arith.constant 111 : index
    %17 = vector.load %arg8[%c0_23, %c0_24, %c0_25, %c111] : memref<2x2x1x512xf32, #tpu.memory_space<vmem>>, vector<1x2x1x256xf32>
    %18 = vector.shape_cast %17 : vector<1x2x1x256xf32> to vector<2x1x256xf32>
    %19 = vector.shape_cast %3 : vector<1x256xf32> to vector<1x1x256xf32>
    %20 = vector.broadcast %19 : vector<1x1x256xf32> to vector<2x1x256xf32>
    %21 = arith.mulf %18, %20 : vector<2x1x256xf32>
    %c0_26 = arith.constant 0 : index
    %22 = memref.load %arg5[%c0_26] : memref<36xf32, #tpu.memory_space<smem>>
    %23 = vector.broadcast %22 : f32 to vector<2x1x256xf32>
    %24 = arith.mulf %23, %21 : vector<2x1x256xf32>
    %25 = arith.addf %15, %24 : vector<2x1x256xf32>
    %c1_27 = arith.constant 1 : index
    %26 = memref.load %arg5[%c1_27] : memref<36xf32, #tpu.memory_space<smem>>
    %27 = vector.broadcast %26 : f32 to vector<2x1x256xf32>
    %28 = arith.mulf %27, %21 : vector<2x1x256xf32>
    %29 = arith.addf %16, %28 : vector<2x1x256xf32>
    %c1_28 = arith.constant 1 : index
    %c0_29 = arith.constant 0 : index
    %c0_30 = arith.constant 0 : index
    %c111_31 = arith.constant 111 : index
    %30 = vector.load %arg8[%c1_28, %c0_29, %c0_30, %c111_31] : memref<2x2x1x512xf32, #tpu.memory_space<vmem>>, vector<1x2x1x256xf32>
    %31 = vector.shape_cast %30 : vector<1x2x1x256xf32> to vector<2x1x256xf32>
    %32 = vector.shape_cast %3 : vector<1x256xf32> to vector<1x1x256xf32>
    %33 = vector.broadcast %32 : vector<1x1x256xf32> to vector<2x1x256xf32>
    %34 = arith.mulf %31, %33 : vector<2x1x256xf32>
    %c2_32 = arith.constant 2 : index
    %35 = memref.load %arg5[%c2_32] : memref<36xf32, #tpu.memory_space<smem>>
    %36 = vector.broadcast %35 : f32 to vector<2x1x256xf32>
    %37 = arith.mulf %36, %34 : vector<2x1x256xf32>
    %38 = arith.addf %25, %37 : vector<2x1x256xf32>
    %c3_33 = arith.constant 3 : index
    %39 = memref.load %arg5[%c3_33] : memref<36xf32, #tpu.memory_space<smem>>
    %40 = vector.broadcast %39 : f32 to vector<2x1x256xf32>
    %41 = arith.mulf %40, %34 : vector<2x1x256xf32>
    %42 = arith.addf %29, %41 : vector<2x1x256xf32>
    %c0_34 = arith.constant 0 : index
    %c0_35 = arith.constant 0 : index
    %c0_36 = arith.constant 0 : index
    %c112 = arith.constant 112 : index
    %43 = vector.load %arg8[%c0_34, %c0_35, %c0_36, %c112] : memref<2x2x1x512xf32, #tpu.memory_space<vmem>>, vector<1x2x1x256xf32>
    %44 = vector.shape_cast %43 : vector<1x2x1x256xf32> to vector<2x1x256xf32>
    %c4 = arith.constant 4 : index
    %45 = memref.load %arg5[%c4] : memref<36xf32, #tpu.memory_space<smem>>
    %46 = vector.broadcast %45 : f32 to vector<2x1x256xf32>
    %47 = arith.mulf %46, %44 : vector<2x1x256xf32>
    %48 = arith.addf %38, %47 : vector<2x1x256xf32>
    %c5 = arith.constant 5 : index
    %49 = memref.load %arg5[%c5] : memref<36xf32, #tpu.memory_space<smem>>
    %50 = vector.broadcast %49 : f32 to vector<2x1x256xf32>
    %51 = arith.mulf %50, %44 : vector<2x1x256xf32>
    %52 = arith.addf %42, %51 : vector<2x1x256xf32>
    %c1_37 = arith.constant 1 : index
    %c0_38 = arith.constant 0 : index
    %c0_39 = arith.constant 0 : index
    %c112_40 = arith.constant 112 : index
    %53 = vector.load %arg8[%c1_37, %c0_38, %c0_39, %c112_40] : memref<2x2x1x512xf32, #tpu.memory_space<vmem>>, vector<1x2x1x256xf32>
    %54 = vector.shape_cast %53 : vector<1x2x1x256xf32> to vector<2x1x256xf32>
    %c6 = arith.constant 6 : index
    %55 = memref.load %arg5[%c6] : memref<36xf32, #tpu.memory_space<smem>>
    %56 = vector.broadcast %55 : f32 to vector<2x1x256xf32>
    %57 = arith.mulf %56, %54 : vector<2x1x256xf32>
    %58 = arith.addf %48, %57 : vector<2x1x256xf32>
    %c7 = arith.constant 7 : index
    %59 = memref.load %arg5[%c7] : memref<36xf32, #tpu.memory_space<smem>>
    %60 = vector.broadcast %59 : f32 to vector<2x1x256xf32>
    %61 = arith.mulf %60, %54 : vector<2x1x256xf32>
    %62 = arith.addf %52, %61 : vector<2x1x256xf32>
    %c0_41 = arith.constant 0 : index
    %c0_42 = arith.constant 0 : index
    %c0_43 = arith.constant 0 : index
    %c113 = arith.constant 113 : index
    %63 = vector.load %arg8[%c0_41, %c0_42, %c0_43, %c113] : memref<2x2x1x512xf32, #tpu.memory_space<vmem>>, vector<1x2x1x256xf32>
    %64 = vector.shape_cast %63 : vector<1x2x1x256xf32> to vector<2x1x256xf32>
    %65 = vector.shape_cast %4 : vector<1x256xf32> to vector<1x1x256xf32>
    %66 = vector.broadcast %65 : vector<1x1x256xf32> to vector<2x1x256xf32>
    %67 = arith.mulf %64, %66 : vector<2x1x256xf32>
    %c8 = arith.constant 8 : index
    %68 = memref.load %arg5[%c8] : memref<36xf32, #tpu.memory_space<smem>>
    %69 = vector.broadcast %68 : f32 to vector<2x1x256xf32>
    %70 = arith.mulf %69, %67 : vector<2x1x256xf32>
    %71 = arith.addf %58, %70 : vector<2x1x256xf32>
    %c9 = arith.constant 9 : index
    %72 = memref.load %arg5[%c9] : memref<36xf32, #tpu.memory_space<smem>>
    %73 = vector.broadcast %72 : f32 to vector<2x1x256xf32>
    %74 = arith.mulf %73, %67 : vector<2x1x256xf32>
    %75 = arith.addf %62, %74 : vector<2x1x256xf32>
    %c1_44 = arith.constant 1 : index
    %c0_45 = arith.constant 0 : index
    %c0_46 = arith.constant 0 : index
    %c113_47 = arith.constant 113 : index
    %76 = vector.load %arg8[%c1_44, %c0_45, %c0_46, %c113_47] : memref<2x2x1x512xf32, #tpu.memory_space<vmem>>, vector<1x2x1x256xf32>
    %77 = vector.shape_cast %76 : vector<1x2x1x256xf32> to vector<2x1x256xf32>
    %78 = vector.shape_cast %4 : vector<1x256xf32> to vector<1x1x256xf32>
    %79 = vector.broadcast %78 : vector<1x1x256xf32> to vector<2x1x256xf32>
    %80 = arith.mulf %77, %79 : vector<2x1x256xf32>
    %c10 = arith.constant 10 : index
    %81 = memref.load %arg5[%c10] : memref<36xf32, #tpu.memory_space<smem>>
    %82 = vector.broadcast %81 : f32 to vector<2x1x256xf32>
    %83 = arith.mulf %82, %80 : vector<2x1x256xf32>
    %84 = arith.addf %71, %83 : vector<2x1x256xf32>
    %c11 = arith.constant 11 : index
    %85 = memref.load %arg5[%c11] : memref<36xf32, #tpu.memory_space<smem>>
    %86 = vector.broadcast %85 : f32 to vector<2x1x256xf32>
    %87 = arith.mulf %86, %80 : vector<2x1x256xf32>
    %88 = arith.addf %75, %87 : vector<2x1x256xf32>
    %c0_48 = arith.constant 0 : index
    %c0_49 = arith.constant 0 : index
    %c0_50 = arith.constant 0 : index
    %c127 = arith.constant 127 : index
    %89 = vector.load %arg8[%c0_48, %c0_49, %c0_50, %c127] : memref<2x2x1x512xf32, #tpu.memory_space<vmem>>, vector<1x2x1x256xf32>
    %90 = vector.shape_cast %89 : vector<1x2x1x256xf32> to vector<2x1x256xf32>
    %91 = vector.shape_cast %3 : vector<1x256xf32> to vector<1x1x256xf32>
    %92 = vector.broadcast %91 : vector<1x1x256xf32> to vector<2x1x256xf32>
    %93 = arith.mulf %90, %92 : vector<2x1x256xf32>
    %c12 = arith.constant 12 : index
    %94 = memref.load %arg5[%c12] : memref<36xf32, #tpu.memory_space<smem>>
    %95 = vector.broadcast %94 : f32 to vector<2x1x256xf32>
    %96 = arith.mulf %95, %93 : vector<2x1x256xf32>
    %97 = arith.addf %84, %96 : vector<2x1x256xf32>
    %c13 = arith.constant 13 : index
    %98 = memref.load %arg5[%c13] : memref<36xf32, #tpu.memory_space<smem>>
    %99 = vector.broadcast %98 : f32 to vector<2x1x256xf32>
    %100 = arith.mulf %99, %93 : vector<2x1x256xf32>
    %101 = arith.addf %88, %100 : vector<2x1x256xf32>
    %c1_51 = arith.constant 1 : index
    %c0_52 = arith.constant 0 : index
    %c0_53 = arith.constant 0 : index
    %c127_54 = arith.constant 127 : index
    %102 = vector.load %arg8[%c1_51, %c0_52, %c0_53, %c127_54] : memref<2x2x1x512xf32, #tpu.memory_space<vmem>>, vector<1x2x1x256xf32>
    %103 = vector.shape_cast %102 : vector<1x2x1x256xf32> to vector<2x1x256xf32>
    %104 = vector.shape_cast %3 : vector<1x256xf32> to vector<1x1x256xf32>
    %105 = vector.broadcast %104 : vector<1x1x256xf32> to vector<2x1x256xf32>
    %106 = arith.mulf %103, %105 : vector<2x1x256xf32>
    %c14 = arith.constant 14 : index
    %107 = memref.load %arg5[%c14] : memref<36xf32, #tpu.memory_space<smem>>
    %108 = vector.broadcast %107 : f32 to vector<2x1x256xf32>
    %109 = arith.mulf %108, %106 : vector<2x1x256xf32>
    %110 = arith.addf %97, %109 : vector<2x1x256xf32>
    %c15 = arith.constant 15 : index
    %111 = memref.load %arg5[%c15] : memref<36xf32, #tpu.memory_space<smem>>
    %112 = vector.broadcast %111 : f32 to vector<2x1x256xf32>
    %113 = arith.mulf %112, %106 : vector<2x1x256xf32>
    %114 = arith.addf %101, %113 : vector<2x1x256xf32>
    %c0_55 = arith.constant 0 : index
    %c0_56 = arith.constant 0 : index
    %c0_57 = arith.constant 0 : index
    %c128_58 = arith.constant 128 : index
    %115 = vector.load %arg8[%c0_55, %c0_56, %c0_57, %c128_58] : memref<2x2x1x512xf32, #tpu.memory_space<vmem>>, vector<1x2x1x256xf32>
    %116 = vector.shape_cast %115 : vector<1x2x1x256xf32> to vector<2x1x256xf32>
    %c16 = arith.constant 16 : index
    %117 = memref.load %arg5[%c16] : memref<36xf32, #tpu.memory_space<smem>>
    %118 = vector.broadcast %117 : f32 to vector<2x1x256xf32>
    %119 = arith.mulf %118, %116 : vector<2x1x256xf32>
    %120 = arith.addf %110, %119 : vector<2x1x256xf32>
    %c17 = arith.constant 17 : index
    %121 = memref.load %arg5[%c17] : memref<36xf32, #tpu.memory_space<smem>>
    %122 = vector.broadcast %121 : f32 to vector<2x1x256xf32>
    %123 = arith.mulf %122, %116 : vector<2x1x256xf32>
    %124 = arith.addf %114, %123 : vector<2x1x256xf32>
    %c1_59 = arith.constant 1 : index
    %c0_60 = arith.constant 0 : index
    %c0_61 = arith.constant 0 : index
    %c128_62 = arith.constant 128 : index
    %125 = vector.load %arg8[%c1_59, %c0_60, %c0_61, %c128_62] : memref<2x2x1x512xf32, #tpu.memory_space<vmem>>, vector<1x2x1x256xf32>
    %126 = vector.shape_cast %125 : vector<1x2x1x256xf32> to vector<2x1x256xf32>
    %c18 = arith.constant 18 : index
    %127 = memref.load %arg5[%c18] : memref<36xf32, #tpu.memory_space<smem>>
    %128 = vector.broadcast %127 : f32 to vector<2x1x256xf32>
    %129 = arith.mulf %128, %126 : vector<2x1x256xf32>
    %130 = arith.addf %120, %129 : vector<2x1x256xf32>
    %c19 = arith.constant 19 : index
    %131 = memref.load %arg5[%c19] : memref<36xf32, #tpu.memory_space<smem>>
    %132 = vector.broadcast %131 : f32 to vector<2x1x256xf32>
    %133 = arith.mulf %132, %126 : vector<2x1x256xf32>
    %134 = arith.addf %124, %133 : vector<2x1x256xf32>
    %c0_63 = arith.constant 0 : index
    %c0_64 = arith.constant 0 : index
    %c0_65 = arith.constant 0 : index
    %c129 = arith.constant 129 : index
    %135 = vector.load %arg8[%c0_63, %c0_64, %c0_65, %c129] : memref<2x2x1x512xf32, #tpu.memory_space<vmem>>, vector<1x2x1x256xf32>
    %136 = vector.shape_cast %135 : vector<1x2x1x256xf32> to vector<2x1x256xf32>
    %137 = vector.shape_cast %4 : vector<1x256xf32> to vector<1x1x256xf32>
    %138 = vector.broadcast %137 : vector<1x1x256xf32> to vector<2x1x256xf32>
    %139 = arith.mulf %136, %138 : vector<2x1x256xf32>
    %c20 = arith.constant 20 : index
    %140 = memref.load %arg5[%c20] : memref<36xf32, #tpu.memory_space<smem>>
    %141 = vector.broadcast %140 : f32 to vector<2x1x256xf32>
    %142 = arith.mulf %141, %139 : vector<2x1x256xf32>
    %143 = arith.addf %130, %142 : vector<2x1x256xf32>
    %c21 = arith.constant 21 : index
    %144 = memref.load %arg5[%c21] : memref<36xf32, #tpu.memory_space<smem>>
    %145 = vector.broadcast %144 : f32 to vector<2x1x256xf32>
    %146 = arith.mulf %145, %139 : vector<2x1x256xf32>
    %147 = arith.addf %134, %146 : vector<2x1x256xf32>
    %c1_66 = arith.constant 1 : index
    %c0_67 = arith.constant 0 : index
    %c0_68 = arith.constant 0 : index
    %c129_69 = arith.constant 129 : index
    %148 = vector.load %arg8[%c1_66, %c0_67, %c0_68, %c129_69] : memref<2x2x1x512xf32, #tpu.memory_space<vmem>>, vector<1x2x1x256xf32>
    %149 = vector.shape_cast %148 : vector<1x2x1x256xf32> to vector<2x1x256xf32>
    %150 = vector.shape_cast %4 : vector<1x256xf32> to vector<1x1x256xf32>
    %151 = vector.broadcast %150 : vector<1x1x256xf32> to vector<2x1x256xf32>
    %152 = arith.mulf %149, %151 : vector<2x1x256xf32>
    %c22 = arith.constant 22 : index
    %153 = memref.load %arg5[%c22] : memref<36xf32, #tpu.memory_space<smem>>
    %154 = vector.broadcast %153 : f32 to vector<2x1x256xf32>
    %155 = arith.mulf %154, %152 : vector<2x1x256xf32>
    %156 = arith.addf %143, %155 : vector<2x1x256xf32>
    %c23 = arith.constant 23 : index
    %157 = memref.load %arg5[%c23] : memref<36xf32, #tpu.memory_space<smem>>
    %158 = vector.broadcast %157 : f32 to vector<2x1x256xf32>
    %159 = arith.mulf %158, %152 : vector<2x1x256xf32>
    %160 = arith.addf %147, %159 : vector<2x1x256xf32>
    %c0_70 = arith.constant 0 : index
    %c0_71 = arith.constant 0 : index
    %c0_72 = arith.constant 0 : index
    %c143 = arith.constant 143 : index
    %161 = vector.load %arg8[%c0_70, %c0_71, %c0_72, %c143] : memref<2x2x1x512xf32, #tpu.memory_space<vmem>>, vector<1x2x1x256xf32>
    %162 = vector.shape_cast %161 : vector<1x2x1x256xf32> to vector<2x1x256xf32>
    %163 = vector.shape_cast %3 : vector<1x256xf32> to vector<1x1x256xf32>
    %164 = vector.broadcast %163 : vector<1x1x256xf32> to vector<2x1x256xf32>
    %165 = arith.mulf %162, %164 : vector<2x1x256xf32>
    %c24 = arith.constant 24 : index
    %166 = memref.load %arg5[%c24] : memref<36xf32, #tpu.memory_space<smem>>
    %167 = vector.broadcast %166 : f32 to vector<2x1x256xf32>
    %168 = arith.mulf %167, %165 : vector<2x1x256xf32>
    %169 = arith.addf %156, %168 : vector<2x1x256xf32>
    %c25 = arith.constant 25 : index
    %170 = memref.load %arg5[%c25] : memref<36xf32, #tpu.memory_space<smem>>
    %171 = vector.broadcast %170 : f32 to vector<2x1x256xf32>
    %172 = arith.mulf %171, %165 : vector<2x1x256xf32>
    %173 = arith.addf %160, %172 : vector<2x1x256xf32>
    %c1_73 = arith.constant 1 : index
    %c0_74 = arith.constant 0 : index
    %c0_75 = arith.constant 0 : index
    %c143_76 = arith.constant 143 : index
    %174 = vector.load %arg8[%c1_73, %c0_74, %c0_75, %c143_76] : memref<2x2x1x512xf32, #tpu.memory_space<vmem>>, vector<1x2x1x256xf32>
    %175 = vector.shape_cast %174 : vector<1x2x1x256xf32> to vector<2x1x256xf32>
    %176 = vector.shape_cast %3 : vector<1x256xf32> to vector<1x1x256xf32>
    %177 = vector.broadcast %176 : vector<1x1x256xf32> to vector<2x1x256xf32>
    %178 = arith.mulf %175, %177 : vector<2x1x256xf32>
    %c26 = arith.constant 26 : index
    %179 = memref.load %arg5[%c26] : memref<36xf32, #tpu.memory_space<smem>>
    %180 = vector.broadcast %179 : f32 to vector<2x1x256xf32>
    %181 = arith.mulf %180, %178 : vector<2x1x256xf32>
    %182 = arith.addf %169, %181 : vector<2x1x256xf32>
    %c27 = arith.constant 27 : index
    %183 = memref.load %arg5[%c27] : memref<36xf32, #tpu.memory_space<smem>>
    %184 = vector.broadcast %183 : f32 to vector<2x1x256xf32>
    %185 = arith.mulf %184, %178 : vector<2x1x256xf32>
    %186 = arith.addf %173, %185 : vector<2x1x256xf32>
    %c0_77 = arith.constant 0 : index
    %c0_78 = arith.constant 0 : index
    %c0_79 = arith.constant 0 : index
    %c144 = arith.constant 144 : index
    %187 = vector.load %arg8[%c0_77, %c0_78, %c0_79, %c144] : memref<2x2x1x512xf32, #tpu.memory_space<vmem>>, vector<1x2x1x256xf32>
    %188 = vector.shape_cast %187 : vector<1x2x1x256xf32> to vector<2x1x256xf32>
    %c28 = arith.constant 28 : index
    %189 = memref.load %arg5[%c28] : memref<36xf32, #tpu.memory_space<smem>>
    %190 = vector.broadcast %189 : f32 to vector<2x1x256xf32>
    %191 = arith.mulf %190, %188 : vector<2x1x256xf32>
    %192 = arith.addf %182, %191 : vector<2x1x256xf32>
    %c29 = arith.constant 29 : index
    %193 = memref.load %arg5[%c29] : memref<36xf32, #tpu.memory_space<smem>>
    %194 = vector.broadcast %193 : f32 to vector<2x1x256xf32>
    %195 = arith.mulf %194, %188 : vector<2x1x256xf32>
    %196 = arith.addf %186, %195 : vector<2x1x256xf32>
    %c1_80 = arith.constant 1 : index
    %c0_81 = arith.constant 0 : index
    %c0_82 = arith.constant 0 : index
    %c144_83 = arith.constant 144 : index
    %197 = vector.load %arg8[%c1_80, %c0_81, %c0_82, %c144_83] : memref<2x2x1x512xf32, #tpu.memory_space<vmem>>, vector<1x2x1x256xf32>
    %198 = vector.shape_cast %197 : vector<1x2x1x256xf32> to vector<2x1x256xf32>
    %c30 = arith.constant 30 : index
    %199 = memref.load %arg5[%c30] : memref<36xf32, #tpu.memory_space<smem>>
    %200 = vector.broadcast %199 : f32 to vector<2x1x256xf32>
    %201 = arith.mulf %200, %198 : vector<2x1x256xf32>
    %202 = arith.addf %192, %201 : vector<2x1x256xf32>
    %c31 = arith.constant 31 : index
    %203 = memref.load %arg5[%c31] : memref<36xf32, #tpu.memory_space<smem>>
    %204 = vector.broadcast %203 : f32 to vector<2x1x256xf32>
    %205 = arith.mulf %204, %198 : vector<2x1x256xf32>
    %206 = arith.addf %196, %205 : vector<2x1x256xf32>
    %c0_84 = arith.constant 0 : index
    %c0_85 = arith.constant 0 : index
    %c0_86 = arith.constant 0 : index
    %c145 = arith.constant 145 : index
    %207 = vector.load %arg8[%c0_84, %c0_85, %c0_86, %c145] : memref<2x2x1x512xf32, #tpu.memory_space<vmem>>, vector<1x2x1x256xf32>
    %208 = vector.shape_cast %207 : vector<1x2x1x256xf32> to vector<2x1x256xf32>
    %209 = vector.shape_cast %4 : vector<1x256xf32> to vector<1x1x256xf32>
    %210 = vector.broadcast %209 : vector<1x1x256xf32> to vector<2x1x256xf32>
    %211 = arith.mulf %208, %210 : vector<2x1x256xf32>
    %c32 = arith.constant 32 : index
    %212 = memref.load %arg5[%c32] : memref<36xf32, #tpu.memory_space<smem>>
    %213 = vector.broadcast %212 : f32 to vector<2x1x256xf32>
    %214 = arith.mulf %213, %211 : vector<2x1x256xf32>
    %215 = arith.addf %202, %214 : vector<2x1x256xf32>
    %c33 = arith.constant 33 : index
    %216 = memref.load %arg5[%c33] : memref<36xf32, #tpu.memory_space<smem>>
    %217 = vector.broadcast %216 : f32 to vector<2x1x256xf32>
    %218 = arith.mulf %217, %211 : vector<2x1x256xf32>
    %219 = arith.addf %206, %218 : vector<2x1x256xf32>
    %c1_87 = arith.constant 1 : index
    %c0_88 = arith.constant 0 : index
    %c0_89 = arith.constant 0 : index
    %c145_90 = arith.constant 145 : index
    %220 = vector.load %arg8[%c1_87, %c0_88, %c0_89, %c145_90] : memref<2x2x1x512xf32, #tpu.memory_space<vmem>>, vector<1x2x1x256xf32>
    %221 = vector.shape_cast %220 : vector<1x2x1x256xf32> to vector<2x1x256xf32>
    %222 = vector.shape_cast %4 : vector<1x256xf32> to vector<1x1x256xf32>
    %223 = vector.broadcast %222 : vector<1x1x256xf32> to vector<2x1x256xf32>
    %224 = arith.mulf %221, %223 : vector<2x1x256xf32>
    %c34 = arith.constant 34 : index
    %225 = memref.load %arg5[%c34] : memref<36xf32, #tpu.memory_space<smem>>
    %226 = vector.broadcast %225 : f32 to vector<2x1x256xf32>
    %227 = arith.mulf %226, %224 : vector<2x1x256xf32>
    %228 = arith.addf %215, %227 : vector<2x1x256xf32>
    %c35 = arith.constant 35 : index
    %229 = memref.load %arg5[%c35] : memref<36xf32, #tpu.memory_space<smem>>
    %230 = vector.broadcast %229 : f32 to vector<2x1x256xf32>
    %231 = arith.mulf %230, %224 : vector<2x1x256xf32>
    %232 = arith.addf %219, %231 : vector<2x1x256xf32>
    %c0_91 = arith.constant 0 : index
    %233 = memref.load %arg6[%c0_91] : memref<2xf32, #tpu.memory_space<smem>>
    %234 = vector.broadcast %233 : f32 to vector<2x1x256xf32>
    %235 = arith.addf %228, %234 : vector<2x1x256xf32>
    %c1_92 = arith.constant 1 : index
    %236 = memref.load %arg6[%c1_92] : memref<2xf32, #tpu.memory_space<smem>>
    %237 = vector.broadcast %236 : f32 to vector<2x1x256xf32>
    %238 = arith.addf %232, %237 : vector<2x1x256xf32>
    %239 = arith.subf %7, %235 : vector<2x1x256xf32>
    %240 = arith.subf %8, %238 : vector<2x1x256xf32>
    %c0_93 = arith.constant 0 : index
    %c0_94 = arith.constant 0 : index
    %c0_95 = arith.constant 0 : index
    %c128_96 = arith.constant 128 : index
    %241 = vector.load %arg8[%c0_93, %c0_94, %c0_95, %c128_96] : memref<2x2x1x512xf32, #tpu.memory_space<vmem>>, vector<1x2x1x256xf32>
    %242 = vector.shape_cast %241 : vector<1x2x1x256xf32> to vector<2x1x256xf32>
    %243 = vector.shape_cast %239 : vector<2x1x256xf32> to vector<1x2x1x256xf32>
    tpu.vector_store %arg8[%c0_93, %c0_94, %c0_95, %c128_96], %243 {strides = array<i32>} : memref<2x2x1x512xf32, #tpu.memory_space<vmem>>, vector<1x2x1x256xf32>,
    %c1_97 = arith.constant 1 : index
    %c0_98 = arith.constant 0 : index
    %c0_99 = arith.constant 0 : index
    %c128_100 = arith.constant 128 : index
    %244 = vector.load %arg8[%c1_97, %c0_98, %c0_99, %c128_100] : memref<2x2x1x512xf32, #tpu.memory_space<vmem>>, vector<1x2x1x256xf32>
    %245 = vector.shape_cast %244 : vector<1x2x1x256xf32> to vector<2x1x256xf32>
    %246 = vector.shape_cast %240 : vector<2x1x256xf32> to vector<1x2x1x256xf32>
    tpu.vector_store %arg8[%c1_97, %c0_98, %c0_99, %c128_100], %246 {strides = array<i32>} : memref<2x2x1x512xf32, #tpu.memory_space<vmem>>, vector<1x2x1x256xf32>,
    %cst_101 = arith.constant 0.000000e+00 : f32
    %247 = vector.broadcast %cst_101 : f32 to vector<2x1x256xf32>
    %cst_102 = arith.constant 0.000000e+00 : f32
    %248 = vector.broadcast %cst_102 : f32 to vector<2x1x256xf32>
    %c0_103 = arith.constant 0 : index
    %c0_104 = arith.constant 0 : index
    %c0_105 = arith.constant 0 : index
    %c111_106 = arith.constant 111 : index
    %249 = vector.load %arg8[%c0_103, %c0_104, %c0_105, %c111_106] : memref<2x2x1x512xf32, #tpu.memory_space<vmem>>, vector<1x2x1x256xf32>
    %250 = vector.shape_cast %249 : vector<1x2x1x256xf32> to vector<2x1x256xf32>
    %251 = vector.shape_cast %3 : vector<1x256xf32> to vector<1x1x256xf32>
    %252 = vector.broadcast %251 : vector<1x1x256xf32> to vector<2x1x256xf32>
    %253 = arith.mulf %250, %252 : vector<2x1x256xf32>
    %c0_107 = arith.constant 0 : index
    %254 = memref.load %arg3[%c0_107] : memref<36xf32, #tpu.memory_space<smem>>
    %255 = vector.broadcast %254 : f32 to vector<2x1x256xf32>
    %256 = arith.mulf %255, %253 : vector<2x1x256xf32>
    %257 = arith.addf %247, %256 : vector<2x1x256xf32>
    %c1_108 = arith.constant 1 : index
    %258 = memref.load %arg3[%c1_108] : memref<36xf32, #tpu.memory_space<smem>>
    %259 = vector.broadcast %258 : f32 to vector<2x1x256xf32>
    %260 = arith.mulf %259, %253 : vector<2x1x256xf32>
    %261 = arith.addf %248, %260 : vector<2x1x256xf32>
    %c1_109 = arith.constant 1 : index
    %c0_110 = arith.constant 0 : index
    %c0_111 = arith.constant 0 : index
    %c111_112 = arith.constant 111 : index
    %262 = vector.load %arg8[%c1_109, %c0_110, %c0_111, %c111_112] : memref<2x2x1x512xf32, #tpu.memory_space<vmem>>, vector<1x2x1x256xf32>
    %263 = vector.shape_cast %262 : vector<1x2x1x256xf32> to vector<2x1x256xf32>
    %264 = vector.shape_cast %3 : vector<1x256xf32> to vector<1x1x256xf32>
    %265 = vector.broadcast %264 : vector<1x1x256xf32> to vector<2x1x256xf32>
    %266 = arith.mulf %263, %265 : vector<2x1x256xf32>
    %c2_113 = arith.constant 2 : index
    %267 = memref.load %arg3[%c2_113] : memref<36xf32, #tpu.memory_space<smem>>
    %268 = vector.broadcast %267 : f32 to vector<2x1x256xf32>
    %269 = arith.mulf %268, %266 : vector<2x1x256xf32>
    %270 = arith.addf %257, %269 : vector<2x1x256xf32>
    %c3_114 = arith.constant 3 : index
    %271 = memref.load %arg3[%c3_114] : memref<36xf32, #tpu.memory_space<smem>>
    %272 = vector.broadcast %271 : f32 to vector<2x1x256xf32>
    %273 = arith.mulf %272, %266 : vector<2x1x256xf32>
    %274 = arith.addf %261, %273 : vector<2x1x256xf32>
    %c0_115 = arith.constant 0 : index
    %c0_116 = arith.constant 0 : index
    %c0_117 = arith.constant 0 : index
    %c112_118 = arith.constant 112 : index
    %275 = vector.load %arg8[%c0_115, %c0_116, %c0_117, %c112_118] : memref<2x2x1x512xf32, #tpu.memory_space<vmem>>, vector<1x2x1x256xf32>
    %276 = vector.shape_cast %275 : vector<1x2x1x256xf32> to vector<2x1x256xf32>
    %c4_119 = arith.constant 4 : index
    %277 = memref.load %arg3[%c4_119] : memref<36xf32, #tpu.memory_space<smem>>
    %278 = vector.broadcast %277 : f32 to vector<2x1x256xf32>
    %279 = arith.mulf %278, %276 : vector<2x1x256xf32>
    %280 = arith.addf %270, %279 : vector<2x1x256xf32>
    %c5_120 = arith.constant 5 : index
    %281 = memref.load %arg3[%c5_120] : memref<36xf32, #tpu.memory_space<smem>>
    %282 = vector.broadcast %281 : f32 to vector<2x1x256xf32>
    %283 = arith.mulf %282, %276 : vector<2x1x256xf32>
    %284 = arith.addf %274, %283 : vector<2x1x256xf32>
    %c1_121 = arith.constant 1 : index
    %c0_122 = arith.constant 0 : index
    %c0_123 = arith.constant 0 : index
    %c112_124 = arith.constant 112 : index
    %285 = vector.load %arg8[%c1_121, %c0_122, %c0_123, %c112_124] : memref<2x2x1x512xf32, #tpu.memory_space<vmem>>, vector<1x2x1x256xf32>
    %286 = vector.shape_cast %285 : vector<1x2x1x256xf32> to vector<2x1x256xf32>
    %c6_125 = arith.constant 6 : index
    %287 = memref.load %arg3[%c6_125] : memref<36xf32, #tpu.memory_space<smem>>
    %288 = vector.broadcast %287 : f32 to vector<2x1x256xf32>
    %289 = arith.mulf %288, %286 : vector<2x1x256xf32>
    %290 = arith.addf %280, %289 : vector<2x1x256xf32>
    %c7_126 = arith.constant 7 : index
    %291 = memref.load %arg3[%c7_126] : memref<36xf32, #tpu.memory_space<smem>>
    %292 = vector.broadcast %291 : f32 to vector<2x1x256xf32>
    %293 = arith.mulf %292, %286 : vector<2x1x256xf32>
    %294 = arith.addf %284, %293 : vector<2x1x256xf32>
    %c0_127 = arith.constant 0 : index
    %c0_128 = arith.constant 0 : index
    %c0_129 = arith.constant 0 : index
    %c113_130 = arith.constant 113 : index
    %295 = vector.load %arg8[%c0_127, %c0_128, %c0_129, %c113_130] : memref<2x2x1x512xf32, #tpu.memory_space<vmem>>, vector<1x2x1x256xf32>
    %296 = vector.shape_cast %295 : vector<1x2x1x256xf32> to vector<2x1x256xf32>
    %297 = vector.shape_cast %4 : vector<1x256xf32> to vector<1x1x256xf32>
    %298 = vector.broadcast %297 : vector<1x1x256xf32> to vector<2x1x256xf32>
    %299 = arith.mulf %296, %298 : vector<2x1x256xf32>
    %c8_131 = arith.constant 8 : index
    %300 = memref.load %arg3[%c8_131] : memref<36xf32, #tpu.memory_space<smem>>
    %301 = vector.broadcast %300 : f32 to vector<2x1x256xf32>
    %302 = arith.mulf %301, %299 : vector<2x1x256xf32>
    %303 = arith.addf %290, %302 : vector<2x1x256xf32>
    %c9_132 = arith.constant 9 : index
    %304 = memref.load %arg3[%c9_132] : memref<36xf32, #tpu.memory_space<smem>>
    %305 = vector.broadcast %304 : f32 to vector<2x1x256xf32>
    %306 = arith.mulf %305, %299 : vector<2x1x256xf32>
    %307 = arith.addf %294, %306 : vector<2x1x256xf32>
    %c1_133 = arith.constant 1 : index
    %c0_134 = arith.constant 0 : index
    %c0_135 = arith.constant 0 : index
    %c113_136 = arith.constant 113 : index
    %308 = vector.load %arg8[%c1_133, %c0_134, %c0_135, %c113_136] : memref<2x2x1x512xf32, #tpu.memory_space<vmem>>, vector<1x2x1x256xf32>
    %309 = vector.shape_cast %308 : vector<1x2x1x256xf32> to vector<2x1x256xf32>
    %310 = vector.shape_cast %4 : vector<1x256xf32> to vector<1x1x256xf32>
    %311 = vector.broadcast %310 : vector<1x1x256xf32> to vector<2x1x256xf32>
    %312 = arith.mulf %309, %311 : vector<2x1x256xf32>
    %c10_137 = arith.constant 10 : index
    %313 = memref.load %arg3[%c10_137] : memref<36xf32, #tpu.memory_space<smem>>
    %314 = vector.broadcast %313 : f32 to vector<2x1x256xf32>
    %315 = arith.mulf %314, %312 : vector<2x1x256xf32>
    %316 = arith.addf %303, %315 : vector<2x1x256xf32>
    %c11_138 = arith.constant 11 : index
    %317 = memref.load %arg3[%c11_138] : memref<36xf32, #tpu.memory_space<smem>>
    %318 = vector.broadcast %317 : f32 to vector<2x1x256xf32>
    %319 = arith.mulf %318, %312 : vector<2x1x256xf32>
    %320 = arith.addf %307, %319 : vector<2x1x256xf32>
    %c0_139 = arith.constant 0 : index
    %c0_140 = arith.constant 0 : index
    %c0_141 = arith.constant 0 : index
    %c127_142 = arith.constant 127 : index
    %321 = vector.load %arg8[%c0_139, %c0_140, %c0_141, %c127_142] : memref<2x2x1x512xf32, #tpu.memory_space<vmem>>, vector<1x2x1x256xf32>
    %322 = vector.shape_cast %321 : vector<1x2x1x256xf32> to vector<2x1x256xf32>
    %323 = vector.shape_cast %3 : vector<1x256xf32> to vector<1x1x256xf32>
    %324 = vector.broadcast %323 : vector<1x1x256xf32> to vector<2x1x256xf32>
    %325 = arith.mulf %322, %324 : vector<2x1x256xf32>
    %c12_143 = arith.constant 12 : index
    %326 = memref.load %arg3[%c12_143] : memref<36xf32, #tpu.memory_space<smem>>
    %327 = vector.broadcast %326 : f32 to vector<2x1x256xf32>
    %328 = arith.mulf %327, %325 : vector<2x1x256xf32>
    %329 = arith.addf %316, %328 : vector<2x1x256xf32>
    %c13_144 = arith.constant 13 : index
    %330 = memref.load %arg3[%c13_144] : memref<36xf32, #tpu.memory_space<smem>>
    %331 = vector.broadcast %330 : f32 to vector<2x1x256xf32>
    %332 = arith.mulf %331, %325 : vector<2x1x256xf32>
    %333 = arith.addf %320, %332 : vector<2x1x256xf32>
    %c1_145 = arith.constant 1 : index
    %c0_146 = arith.constant 0 : index
    %c0_147 = arith.constant 0 : index
    %c127_148 = arith.constant 127 : index
    %334 = vector.load %arg8[%c1_145, %c0_146, %c0_147, %c127_148] : memref<2x2x1x512xf32, #tpu.memory_space<vmem>>, vector<1x2x1x256xf32>
    %335 = vector.shape_cast %334 : vector<1x2x1x256xf32> to vector<2x1x256xf32>
    %336 = vector.shape_cast %3 : vector<1x256xf32> to vector<1x1x256xf32>
    %337 = vector.broadcast %336 : vector<1x1x256xf32> to vector<2x1x256xf32>
    %338 = arith.mulf %335, %337 : vector<2x1x256xf32>
    %c14_149 = arith.constant 14 : index
    %339 = memref.load %arg3[%c14_149] : memref<36xf32, #tpu.memory_space<smem>>
    %340 = vector.broadcast %339 : f32 to vector<2x1x256xf32>
    %341 = arith.mulf %340, %338 : vector<2x1x256xf32>
    %342 = arith.addf %329, %341 : vector<2x1x256xf32>
    %c15_150 = arith.constant 15 : index
    %343 = memref.load %arg3[%c15_150] : memref<36xf32, #tpu.memory_space<smem>>
    %344 = vector.broadcast %343 : f32 to vector<2x1x256xf32>
    %345 = arith.mulf %344, %338 : vector<2x1x256xf32>
    %346 = arith.addf %333, %345 : vector<2x1x256xf32>
    %c0_151 = arith.constant 0 : index
    %c0_152 = arith.constant 0 : index
    %c0_153 = arith.constant 0 : index
    %c128_154 = arith.constant 128 : index
    %347 = vector.load %arg8[%c0_151, %c0_152, %c0_153, %c128_154] : memref<2x2x1x512xf32, #tpu.memory_space<vmem>>, vector<1x2x1x256xf32>
    %348 = vector.shape_cast %347 : vector<1x2x1x256xf32> to vector<2x1x256xf32>
    %c16_155 = arith.constant 16 : index
    %349 = memref.load %arg3[%c16_155] : memref<36xf32, #tpu.memory_space<smem>>
    %350 = vector.broadcast %349 : f32 to vector<2x1x256xf32>
    %351 = arith.mulf %350, %348 : vector<2x1x256xf32>
    %352 = arith.addf %342, %351 : vector<2x1x256xf32>
    %c17_156 = arith.constant 17 : index
    %353 = memref.load %arg3[%c17_156] : memref<36xf32, #tpu.memory_space<smem>>
    %354 = vector.broadcast %353 : f32 to vector<2x1x256xf32>
    %355 = arith.mulf %354, %348 : vector<2x1x256xf32>
    %356 = arith.addf %346, %355 : vector<2x1x256xf32>
    %c1_157 = arith.constant 1 : index
    %c0_158 = arith.constant 0 : index
    %c0_159 = arith.constant 0 : index
    %c128_160 = arith.constant 128 : index
    %357 = vector.load %arg8[%c1_157, %c0_158, %c0_159, %c128_160] : memref<2x2x1x512xf32, #tpu.memory_space<vmem>>, vector<1x2x1x256xf32>
    %358 = vector.shape_cast %357 : vector<1x2x1x256xf32> to vector<2x1x256xf32>
    %c18_161 = arith.constant 18 : index
    %359 = memref.load %arg3[%c18_161] : memref<36xf32, #tpu.memory_space<smem>>
    %360 = vector.broadcast %359 : f32 to vector<2x1x256xf32>
    %361 = arith.mulf %360, %358 : vector<2x1x256xf32>
    %362 = arith.addf %352, %361 : vector<2x1x256xf32>
    %c19_162 = arith.constant 19 : index
    %363 = memref.load %arg3[%c19_162] : memref<36xf32, #tpu.memory_space<smem>>
    %364 = vector.broadcast %363 : f32 to vector<2x1x256xf32>
    %365 = arith.mulf %364, %358 : vector<2x1x256xf32>
    %366 = arith.addf %356, %365 : vector<2x1x256xf32>
    %c0_163 = arith.constant 0 : index
    %c0_164 = arith.constant 0 : index
    %c0_165 = arith.constant 0 : index
    %c129_166 = arith.constant 129 : index
    %367 = vector.load %arg8[%c0_163, %c0_164, %c0_165, %c129_166] : memref<2x2x1x512xf32, #tpu.memory_space<vmem>>, vector<1x2x1x256xf32>
    %368 = vector.shape_cast %367 : vector<1x2x1x256xf32> to vector<2x1x256xf32>
    %369 = vector.shape_cast %4 : vector<1x256xf32> to vector<1x1x256xf32>
    %370 = vector.broadcast %369 : vector<1x1x256xf32> to vector<2x1x256xf32>
    %371 = arith.mulf %368, %370 : vector<2x1x256xf32>
    %c20_167 = arith.constant 20 : index
    %372 = memref.load %arg3[%c20_167] : memref<36xf32, #tpu.memory_space<smem>>
    %373 = vector.broadcast %372 : f32 to vector<2x1x256xf32>
    %374 = arith.mulf %373, %371 : vector<2x1x256xf32>
    %375 = arith.addf %362, %374 : vector<2x1x256xf32>
    %c21_168 = arith.constant 21 : index
    %376 = memref.load %arg3[%c21_168] : memref<36xf32, #tpu.memory_space<smem>>
    %377 = vector.broadcast %376 : f32 to vector<2x1x256xf32>
    %378 = arith.mulf %377, %371 : vector<2x1x256xf32>
    %379 = arith.addf %366, %378 : vector<2x1x256xf32>
    %c1_169 = arith.constant 1 : index
    %c0_170 = arith.constant 0 : index
    %c0_171 = arith.constant 0 : index
    %c129_172 = arith.constant 129 : index
    %380 = vector.load %arg8[%c1_169, %c0_170, %c0_171, %c129_172] : memref<2x2x1x512xf32, #tpu.memory_space<vmem>>, vector<1x2x1x256xf32>
    %381 = vector.shape_cast %380 : vector<1x2x1x256xf32> to vector<2x1x256xf32>
    %382 = vector.shape_cast %4 : vector<1x256xf32> to vector<1x1x256xf32>
    %383 = vector.broadcast %382 : vector<1x1x256xf32> to vector<2x1x256xf32>
    %384 = arith.mulf %381, %383 : vector<2x1x256xf32>
    %c22_173 = arith.constant 22 : index
    %385 = memref.load %arg3[%c22_173] : memref<36xf32, #tpu.memory_space<smem>>
    %386 = vector.broadcast %385 : f32 to vector<2x1x256xf32>
    %387 = arith.mulf %386, %384 : vector<2x1x256xf32>
    %388 = arith.addf %375, %387 : vector<2x1x256xf32>
    %c23_174 = arith.constant 23 : index
    %389 = memref.load %arg3[%c23_174] : memref<36xf32, #tpu.memory_space<smem>>
    %390 = vector.broadcast %389 : f32 to vector<2x1x256xf32>
    %391 = arith.mulf %390, %384 : vector<2x1x256xf32>
    %392 = arith.addf %379, %391 : vector<2x1x256xf32>
    %c0_175 = arith.constant 0 : index
    %c0_176 = arith.constant 0 : index
    %c0_177 = arith.constant 0 : index
    %c143_178 = arith.constant 143 : index
    %393 = vector.load %arg8[%c0_175, %c0_176, %c0_177, %c143_178] : memref<2x2x1x512xf32, #tpu.memory_space<vmem>>, vector<1x2x1x256xf32>
    %394 = vector.shape_cast %393 : vector<1x2x1x256xf32> to vector<2x1x256xf32>
    %395 = vector.shape_cast %3 : vector<1x256xf32> to vector<1x1x256xf32>
    %396 = vector.broadcast %395 : vector<1x1x256xf32> to vector<2x1x256xf32>
    %397 = arith.mulf %394, %396 : vector<2x1x256xf32>
    %c24_179 = arith.constant 24 : index
    %398 = memref.load %arg3[%c24_179] : memref<36xf32, #tpu.memory_space<smem>>
    %399 = vector.broadcast %398 : f32 to vector<2x1x256xf32>
    %400 = arith.mulf %399, %397 : vector<2x1x256xf32>
    %401 = arith.addf %388, %400 : vector<2x1x256xf32>
    %c25_180 = arith.constant 25 : index
    %402 = memref.load %arg3[%c25_180] : memref<36xf32, #tpu.memory_space<smem>>
    %403 = vector.broadcast %402 : f32 to vector<2x1x256xf32>
    %404 = arith.mulf %403, %397 : vector<2x1x256xf32>
    %405 = arith.addf %392, %404 : vector<2x1x256xf32>
    %c1_181 = arith.constant 1 : index
    %c0_182 = arith.constant 0 : index
    %c0_183 = arith.constant 0 : index
    %c143_184 = arith.constant 143 : index
    %406 = vector.load %arg8[%c1_181, %c0_182, %c0_183, %c143_184] : memref<2x2x1x512xf32, #tpu.memory_space<vmem>>, vector<1x2x1x256xf32>
    %407 = vector.shape_cast %406 : vector<1x2x1x256xf32> to vector<2x1x256xf32>
    %408 = vector.shape_cast %3 : vector<1x256xf32> to vector<1x1x256xf32>
    %409 = vector.broadcast %408 : vector<1x1x256xf32> to vector<2x1x256xf32>
    %410 = arith.mulf %407, %409 : vector<2x1x256xf32>
    %c26_185 = arith.constant 26 : index
    %411 = memref.load %arg3[%c26_185] : memref<36xf32, #tpu.memory_space<smem>>
    %412 = vector.broadcast %411 : f32 to vector<2x1x256xf32>
    %413 = arith.mulf %412, %410 : vector<2x1x256xf32>
    %414 = arith.addf %401, %413 : vector<2x1x256xf32>
    %c27_186 = arith.constant 27 : index
    %415 = memref.load %arg3[%c27_186] : memref<36xf32, #tpu.memory_space<smem>>
    %416 = vector.broadcast %415 : f32 to vector<2x1x256xf32>
    %417 = arith.mulf %416, %410 : vector<2x1x256xf32>
    %418 = arith.addf %405, %417 : vector<2x1x256xf32>
    %c0_187 = arith.constant 0 : index
    %c0_188 = arith.constant 0 : index
    %c0_189 = arith.constant 0 : index
    %c144_190 = arith.constant 144 : index
    %419 = vector.load %arg8[%c0_187, %c0_188, %c0_189, %c144_190] : memref<2x2x1x512xf32, #tpu.memory_space<vmem>>, vector<1x2x1x256xf32>
    %420 = vector.shape_cast %419 : vector<1x2x1x256xf32> to vector<2x1x256xf32>
    %c28_191 = arith.constant 28 : index
    %421 = memref.load %arg3[%c28_191] : memref<36xf32, #tpu.memory_space<smem>>
    %422 = vector.broadcast %421 : f32 to vector<2x1x256xf32>
    %423 = arith.mulf %422, %420 : vector<2x1x256xf32>
    %424 = arith.addf %414, %423 : vector<2x1x256xf32>
    %c29_192 = arith.constant 29 : index
    %425 = memref.load %arg3[%c29_192] : memref<36xf32, #tpu.memory_space<smem>>
    %426 = vector.broadcast %425 : f32 to vector<2x1x256xf32>
    %427 = arith.mulf %426, %420 : vector<2x1x256xf32>
    %428 = arith.addf %418, %427 : vector<2x1x256xf32>
    %c1_193 = arith.constant 1 : index
    %c0_194 = arith.constant 0 : index
    %c0_195 = arith.constant 0 : index
    %c144_196 = arith.constant 144 : index
    %429 = vector.load %arg8[%c1_193, %c0_194, %c0_195, %c144_196] : memref<2x2x1x512xf32, #tpu.memory_space<vmem>>, vector<1x2x1x256xf32>
    %430 = vector.shape_cast %429 : vector<1x2x1x256xf32> to vector<2x1x256xf32>
    %c30_197 = arith.constant 30 : index
    %431 = memref.load %arg3[%c30_197] : memref<36xf32, #tpu.memory_space<smem>>
    %432 = vector.broadcast %431 : f32 to vector<2x1x256xf32>
    %433 = arith.mulf %432, %430 : vector<2x1x256xf32>
    %434 = arith.addf %424, %433 : vector<2x1x256xf32>
    %c31_198 = arith.constant 31 : index
    %435 = memref.load %arg3[%c31_198] : memref<36xf32, #tpu.memory_space<smem>>
    %436 = vector.broadcast %435 : f32 to vector<2x1x256xf32>
    %437 = arith.mulf %436, %430 : vector<2x1x256xf32>
    %438 = arith.addf %428, %437 : vector<2x1x256xf32>
    %c0_199 = arith.constant 0 : index
    %c0_200 = arith.constant 0 : index
    %c0_201 = arith.constant 0 : index
    %c145_202 = arith.constant 145 : index
    %439 = vector.load %arg8[%c0_199, %c0_200, %c0_201, %c145_202] : memref<2x2x1x512xf32, #tpu.memory_space<vmem>>, vector<1x2x1x256xf32>
    %440 = vector.shape_cast %439 : vector<1x2x1x256xf32> to vector<2x1x256xf32>
    %441 = vector.shape_cast %4 : vector<1x256xf32> to vector<1x1x256xf32>
    %442 = vector.broadcast %441 : vector<1x1x256xf32> to vector<2x1x256xf32>
    %443 = arith.mulf %440, %442 : vector<2x1x256xf32>
    %c32_203 = arith.constant 32 : index
    %444 = memref.load %arg3[%c32_203] : memref<36xf32, #tpu.memory_space<smem>>
    %445 = vector.broadcast %444 : f32 to vector<2x1x256xf32>
    %446 = arith.mulf %445, %443 : vector<2x1x256xf32>
    %447 = arith.addf %434, %446 : vector<2x1x256xf32>
    %c33_204 = arith.constant 33 : index
    %448 = memref.load %arg3[%c33_204] : memref<36xf32, #tpu.memory_space<smem>>
    %449 = vector.broadcast %448 : f32 to vector<2x1x256xf32>
    %450 = arith.mulf %449, %443 : vector<2x1x256xf32>
    %451 = arith.addf %438, %450 : vector<2x1x256xf32>
    %c1_205 = arith.constant 1 : index
    %c0_206 = arith.constant 0 : index
    %c0_207 = arith.constant 0 : index
    %c145_208 = arith.constant 145 : index
    %452 = vector.load %arg8[%c1_205, %c0_206, %c0_207, %c145_208] : memref<2x2x1x512xf32, #tpu.memory_space<vmem>>, vector<1x2x1x256xf32>
    %453 = vector.shape_cast %452 : vector<1x2x1x256xf32> to vector<2x1x256xf32>
    %454 = vector.shape_cast %4 : vector<1x256xf32> to vector<1x1x256xf32>
    %455 = vector.broadcast %454 : vector<1x1x256xf32> to vector<2x1x256xf32>
    %456 = arith.mulf %453, %455 : vector<2x1x256xf32>
    %c34_209 = arith.constant 34 : index
    %457 = memref.load %arg3[%c34_209] : memref<36xf32, #tpu.memory_space<smem>>
    %458 = vector.broadcast %457 : f32 to vector<2x1x256xf32>
    %459 = arith.mulf %458, %456 : vector<2x1x256xf32>
    %460 = arith.addf %447, %459 : vector<2x1x256xf32>
    %c35_210 = arith.constant 35 : index
    %461 = memref.load %arg3[%c35_210] : memref<36xf32, #tpu.memory_space<smem>>
    %462 = vector.broadcast %461 : f32 to vector<2x1x256xf32>
    %463 = arith.mulf %462, %456 : vector<2x1x256xf32>
    %464 = arith.addf %451, %463 : vector<2x1x256xf32>
    %c0_211 = arith.constant 0 : index
    %465 = memref.load %arg4[%c0_211] : memref<2xf32, #tpu.memory_space<smem>>
    %466 = vector.broadcast %465 : f32 to vector<2x1x256xf32>
    %467 = arith.addf %460, %466 : vector<2x1x256xf32>
    %c1_212 = arith.constant 1 : index
    %468 = memref.load %arg4[%c1_212] : memref<2xf32, #tpu.memory_space<smem>>
    %469 = vector.broadcast %468 : f32 to vector<2x1x256xf32>
    %470 = arith.addf %464, %469 : vector<2x1x256xf32>
    %471 = arith.subf %5, %467 : vector<2x1x256xf32>
    %472 = arith.subf %6, %470 : vector<2x1x256xf32>
    %473 = tpu.iota {dimensions = array<i32: 1>} : vector<2x4x256xi32>
    %474 = vector.shape_cast %471 : vector<2x1x256xf32> to vector<2x1x256xf32>
    %475 = vector.broadcast %474 : vector<2x1x256xf32> to vector<2x4x256xf32>
    %c1_i32 = arith.constant 1 : i32
    %476 = vector.broadcast %c1_i32 : i32 to vector<2x4x256xi32>
    %477 = arith.cmpi eq, %473, %476 : vector<2x4x256xi32>
    %478 = vector.shape_cast %472 : vector<2x1x256xf32> to vector<2x1x256xf32>
    %479 = vector.broadcast %478 : vector<2x1x256xf32> to vector<2x4x256xf32>
    %480 = arith.select %477, %479, %475 : vector<2x4x256xi1>, vector<2x4x256xf32>
    %c2_i32 = arith.constant 2 : i32
    %481 = vector.broadcast %c2_i32 : i32 to vector<2x4x256xi32>
    %482 = arith.cmpi eq, %473, %481 : vector<2x4x256xi32>
    %483 = vector.shape_cast %239 : vector<2x1x256xf32> to vector<2x1x256xf32>
    %484 = vector.broadcast %483 : vector<2x1x256xf32> to vector<2x4x256xf32>
    %485 = arith.select %482, %484, %480 : vector<2x4x256xi1>, vector<2x4x256xf32>
    %c3_i32 = arith.constant 3 : i32
    %486 = vector.broadcast %c3_i32 : i32 to vector<2x4x256xi32>
    %487 = arith.cmpi eq, %473, %486 : vector<2x4x256xi32>
    %488 = vector.shape_cast %240 : vector<2x1x256xf32> to vector<2x1x256xf32>
    %489 = vector.broadcast %488 : vector<2x1x256xf32> to vector<2x4x256xf32>
    %490 = arith.select %487, %489, %485 : vector<2x4x256xi1>, vector<2x4x256xf32>
    %c0_213 = arith.constant 0 : index
    %c0_214 = arith.constant 0 : index
    %c0_215 = arith.constant 0 : index
    %491 = vector.load %arg7[%c0_213, %c0_214, %c0_215] : memref<2x4x256xf32, #tpu.memory_space<vmem>>, vector<2x4x256xf32>
    tpu.vector_store %arg7[%c0_213, %c0_214, %c0_215], %490 {strides = array<i32>} : memref<2x4x256xf32, #tpu.memory_space<vmem>>, vector<2x4x256xf32>,
    return
  }
  func.func @transform_0(%arg0: i32) -> (i32, i32, i32) {
    %c0_i32 = arith.constant 0 : i32
    %c0_i32_0 = arith.constant 0 : i32
    %c0_i32_1 = arith.constant 0 : i32
    return %arg0, %c0_i32, %c0_i32_0 : i32, i32, i32
  }
  func.func @transform_1(%arg0: i32) -> (i32, i32) {
    %c0_i32 = arith.constant 0 : i32
    %c0_i32_0 = arith.constant 0 : i32
    %c0_i32_1 = arith.constant 0 : i32
    return %c0_i32, %c0_i32_0 : i32, i32
  }
  func.func @transform_2(%arg0: i32) -> i32 {
    %c0_i32 = arith.constant 0 : i32
    %c0_i32_0 = arith.constant 0 : i32
    return %c0_i32 : i32
  }
  func.func @transform_3(%arg0: i32) -> i32 {
    %c0_i32 = arith.constant 0 : i32
    %c0_i32_0 = arith.constant 0 : i32
    return %c0_i32 : i32
  }
  func.func @transform_4(%arg0: i32) -> i32 {
    %c0_i32 = arith.constant 0 : i32
    %c0_i32_0 = arith.constant 0 : i32
    return %c0_i32 : i32
  }
  func.func @transform_5(%arg0: i32) -> i32 {
    %c0_i32 = arith.constant 0 : i32
    %c0_i32_0 = arith.constant 0 : i32
    return %c0_i32 : i32
  }
  func.func @transform_6(%arg0: i32) -> (i32, i32, i32) {
    %c0_i32 = arith.constant 0 : i32
    %c0_i32_0 = arith.constant 0 : i32
    %c0_i32_1 = arith.constant 0 : i32
    return %arg0, %c0_i32, %c0_i32_0 : i32, i32, i32
  }
}

</mosaic_0001>

<bundles_post_ra>
// kernel: tpu_custom_call.1
= control target key start
LH: loop header
LB: loop body
LE: loop exit
PB: predicated region body
PF: predicated region fallthrough
CT: control target
= control target key end

     0   :  { %11 = vsyncpa [#allocation4], 0  ;;  %s2765_s0 = inlined_call_operand.hbm [shape: f32[2,4,256], index: 0, kind: input, shape index: {}]   ;;  %s2766_s1 = inlined_call_operand.hbm [shape: f32[2,256], index: 1, kind: input, shape index: {}]   ;;  %s2767_s2 = inlined_call_operand.vmem [shape: f32[36], index: 2, kind: input, shape index: {}]   ;;  %s2768_s3 = inlined_call_operand.vmem [shape: f32[2], index: 3, kind: input, shape index: {}]   ;;  %s2769_s4 = inlined_call_operand.vmem [shape: f32[36], index: 4, kind: input, shape index: {}]   ;;  %s2770_s5 = inlined_call_operand.vmem [shape: f32[2], index: 5, kind: input, shape index: {}]   ;;  %s2771_s6 = inlined_call_operand.hbm [shape: f32[2,4,256], index: 6, kind: output, shape index: {}]  }
   0x1   :  { %12 = vsyncpa [#allocation8], 0 }
   0x2   :  { %13 = vsyncpa [#allocation6], 0 }
   0x3   :  { %14 = vsyncpa [#allocation11], 0 }
   0x4   :  { %15 = vsyncpa [#allocation14], 0  ;;  %s55_s23 = sshll.u32 %s2768_s3, 4  ;;  %s56_s23 = int_to_ptr.vmem [resolvable:$true] %s55_s23 }
   0x5   :  { %16 = vsyncpa [#allocation5], 0  ;;  %s1799_s24 = scalar_lea.vmem %s56_s23, 16  ;;  %p1804_p1 = scmp.lt.s32.totalorder %s56_s23, %s56_s23 }
   0x6   :  { %p1800_p0 = scmp.ne.s32.totalorder %s56_s23, %s1799_s24  ;;  %p1805_p2 = scmp.lt.s32.totalorder %s1799_s24, %s1799_s24 }
   0x8   :  { %p1806_p3 = por %p1805_p2, %p1804_p1 }
   0xa   :  { %p1807_p4 = pnand %p1806_p3, %p1800_p0 }
   0xc   :  { %1810 = shalt.err (!%p1807_p4)
}
   0xd   :  { %s1925_s25 = smov [#allocation10]   ;;  %s1926_s26 = smov [#allocation3]  }
   0xe   :  { %58 = dma.vmem_to_smem %s56_s23, 16, %s1925_s25, [#allocation11]  }
   0xf   :  { %s22_s27 = sshll.u32 %s1926_s26, 4  ;;  %s1811_s30 = scalar_lea.hbm %s2765_s0, 256  ;;  %s23_s27 = int_to_ptr.vmem [resolvable:$true] %s22_s27 }
  0x10   :  { %p1812_p5 = scmp.ne.s32.totalorder %s2765_s0, %s1811_s30  ;;  %p1815_p6 = scmp.lt.u32.totalorder %s1811_s30, %s2765_s0 }
  0x12   :  { %p1817_p7 = pnand %p1815_p6, %p1812_p5 }
  0x14   :  { %1820 = shalt.err (!%p1817_p7)
}
  0x15   :  { %s1821_s10 = scalar_lea.vmem %s23_s27, 256  ;;  %p1826_p9 = scmp.lt.s32.totalorder %s23_s27, %s23_s27 }
  0x16   :  { %p1822_p8 = scmp.ne.s32.totalorder %s23_s27, %s1821_s10  ;;  %p1827_p10 = scmp.lt.s32.totalorder %s1821_s10, %s1821_s10 }
  0x18   :  { %p1828_p11 = por %p1827_p10, %p1826_p9 }
  0x1a   :  { %p1829_p12 = pnand %p1828_p11, %p1822_p8 }
  0x1c   :  { %1832 = shalt.err (!%p1829_p12)
}
  0x1d   :  { %s1927_s11 = smov 128   ;;  %s1928_s12 = smov 8  }
  0x1e   :  { %28 = dma.hbm_to_vmem [thread:$0]  %s2765_s0, 256, %s23_s27, [#allocation4], %s1927_s11, %s1927_s11, %s1928_s12  }
  0x1f   :  { %s45_s17 = sshll.u32 %s2767_s2, 4  ;;  %s1929_s18 = smov [#allocation7]   ;;  %s46_s17 = int_to_ptr.vmem [resolvable:$true] %s45_s17 }
  0x20   :  { %s35_s19 = sshll.u32 %s1929_s18, 4  ;;  %s1833_s22 = scalar_lea.hbm %s2766_s1, 64  ;;  %s36_s19 = int_to_ptr.vmem [resolvable:$true] %s35_s19 }
  0x21   :  { %p1834_p13 = scmp.ne.s32.totalorder %s2766_s1, %s1833_s22  ;;  %p1837_p0 = scmp.lt.u32.totalorder %s1833_s22, %s2766_s1 }
  0x23   :  { %p1839_p1 = pnand %p1837_p0, %p1834_p13 }
  0x25   :  { %1842 = shalt.err (!%p1839_p1)
}
  0x26   :  { %s1843_s0 = scalar_lea.vmem %s36_s19, 64  ;;  %p1848_p3 = scmp.lt.s32.totalorder %s36_s19, %s36_s19 }
  0x27   :  { %p1844_p2 = scmp.ne.s32.totalorder %s36_s19, %s1843_s0  ;;  %p1849_p4 = scmp.lt.s32.totalorder %s1843_s0, %s1843_s0 }
  0x29   :  { %p1850_p5 = por %p1849_p4, %p1848_p3 }
  0x2b   :  { %p1851_p6 = pnand %p1850_p5, %p1844_p2 }
  0x2d   :  { %1854 = shalt.err (!%p1851_p6)
}
  0x2e   :  { %38 = dma.hbm_to_vmem [thread:$0]  %s2766_s1, 64, %s36_s19, [#allocation8]  }
  0x2f   :  { %s1855_s28 = scalar_lea.vmem %s46_s17, 16  ;;  %p1860_p8 = scmp.lt.s32.totalorder %s46_s17, %s46_s17 }
  0x30   :  { %p1856_p7 = scmp.ne.s32.totalorder %s46_s17, %s1855_s28  ;;  %p1861_p9 = scmp.lt.s32.totalorder %s1855_s28, %s1855_s28 }
  0x32   :  { %p1862_p10 = por %p1861_p9, %p1860_p8 }
  0x34   :  { %p1863_p11 = pnand %p1862_p10, %p1856_p7 }
  0x36   :  { %1866 = shalt.err (!%p1863_p11)
}
  0x37   :  { %s1930_s29 = smov [#allocation9]   ;;  %s65_s3 = sshll.u32 %s2769_s4, 4  ;;  %s66_s3 = int_to_ptr.vmem [resolvable:$true] %s65_s3 }
  0x38   :  { %48 = dma.vmem_to_smem %s46_s17, 16, %s1930_s29, [#allocation6]  }
  0x39   :  { %s75_s10 = sshll.u32 %s2770_s5, 4  ;;  %s1867_s13 = scalar_lea.vmem %s66_s3, 16  ;;  %s76_s10 = int_to_ptr.vmem [resolvable:$true] %s75_s10 }
  0x3a   :  { %p1868_p12 = scmp.ne.s32.totalorder %s66_s3, %s1867_s13  ;;  %p1872_p13 = scmp.lt.s32.totalorder %s66_s3, %s66_s3 }
  0x3b   :  { %p1873_p0 = scmp.lt.s32.totalorder %s1867_s13, %s1867_s13 }
  0x3d   :  { %p1874_p1 = por %p1873_p0, %p1872_p13 }
  0x3f   :  { %p1875_p2 = pnand %p1874_p1, %p1868_p12 }
  0x41   :  { %1878 = shalt.err (!%p1875_p2)
}
  0x42   :  { %s1931_s1 = smov [#allocation12]   ;;  %s1879_s14 = scalar_lea.vmem %s76_s10, 16 }
  0x43   :  { %68 = dma.vmem_to_smem %s66_s3, 16, %s1931_s1, [#allocation11]  }
  0x44   :  { %p1880_p3 = scmp.ne.s32.totalorder %s76_s10, %s1879_s14  ;;  %p1884_p4 = scmp.lt.s32.totalorder %s76_s10, %s76_s10 }
  0x45   :  { %p1885_p5 = scmp.lt.s32.totalorder %s1879_s14, %s1879_s14 }
  0x47   :  { %p1886_p6 = por %p1885_p5, %p1884_p4 }
  0x49   :  { %p1887_p7 = pnand %p1886_p6, %p1880_p3 }
  0x4b   :  { %1890 = shalt.err (!%p1887_p7)
}
  0x4c   :  { %s1932_s4 = smov [#allocation13]  }
  0x4d   :  { %78 = dma.vmem_to_smem %s76_s10, 16, %s1932_s4, [#allocation14]  }
  0x4e   :  { %1913 = dma.done.wait [#allocation4], 256  }
  0x4f   :  { %1914 = vsyncadd [#allocation4], 4294967040 }
  0x50   :  { %1915 = dma.done.wait [#allocation8], 64  }
  0x51   :  { %1916 = vsyncadd [#allocation8], 4294967232 }
  0x52   :  { %1917 = dma.done.wait [#allocation6], 16  }
  0x53   :  { %1918 = vsyncadd [#allocation6], 4294967280 }
  0x54   :  { %1919 = dma.done.wait [#allocation11], 32  }
  0x55   :  { %1920 = vsyncadd [#allocation11], 4294967264 }
  0x56   :  { %1921 = dma.done.wait [#allocation14], 16  }
  0x57   :  { %1922 = vsyncadd [#allocation14], 4294967280 }
  0x58   :  { %97 = sfence }
  0x59   :  { %v1704_v0 = vld.sshfl [vmem:[#allocation7] sm:$0x33 pattern:$0x75316420]  ;;  %v2772_v1 = vlaneseq  ;;  %v2792_v4 = vmov 0  ;;  %s1933_s5 = smov 113  }
  0x5a   :  { %v252_v2 = vcombine.high %v1704_v0, %v1704_v0  ;;  %v2021_v3 = vld [vmem:[#allocation3 + $0x8] ss:$4 sm:$0x3]  ;;  %s1934_s15 = smov 1   ;;  %v1935_v5 = vmov 0.0   ;;  %s1708_s16 = sld [smem:[#allocation12 + $0x4]] }
  0x5b   :  { %2791 = vst [vmem:[#allocation22_spill] sm:$0xff] %v2021_v3  ;;  %vm100_vm0 = vcmp.lt.s32.totalorder %v2772_v1, 512  ;;  %vm2025_vm1 = vcmp.lt.s32.totalorder %v2772_v1, 256  ;;  %v2029_v6 = vld [vmem:[#allocation3] ss:$4 sm:$0x3] }
  0x5c   :  { %v2793_v4 = vsel %vm2025_vm1, 4294967295, %v2792_v4  ;;  %253 = vrot.lane.b32.xlu0 %v252_v2, %s1933_s5  ;;  %502 = vrot.lane.b32.xlu1 %v252_v2, %s1934_s15  ;;  %103 = vst.msk [vmem:[#allocation2 + $0x4] sm:$0xf] %vm100_vm0, %v1935_v5  ;;  %102 = vst.msk [vmem:[#allocation2] sm:$0xf] %vm100_vm0, %v1935_v5  ;;  %s1709_s17 = sld [smem:[#allocation12 + $0x5]] }
  0x5d   :  { %2794 = vst [vmem:[#allocation23_spill] sm:$0xff] %v2793_v4  ;;  %104 = vst.msk [vmem:[#allocation2 + $0x8] sm:$0xf] %vm100_vm0, %v1935_v5  ;;  %v2037_v7 = vld [vmem:[#allocation3 + $0x9] ss:$4 sm:$0x3] }
  0x5e   :  { %105 = vst.msk [vmem:[#allocation2 + $0xc] sm:$0xf] %vm100_vm0, %v1935_v5  ;;  %2795 = vst [vmem:[#allocation24_spill] sm:$0xff] %v2029_v6  ;;  %v2042_v8 = vld [vmem:[#allocation3 + $0x1] ss:$4 sm:$0x3] }
  0x5f   :  { %125 = vst.msk [vmem:[#allocation2 + $0x5] sm:$0x3] %vm2025_vm1, %v2021_v3  ;;  %124 = vst.msk [vmem:[#allocation2 + $0x1] sm:$0x3] %vm2025_vm1, %v2029_v6  ;;  %s1936_s18 = smov 127   ;;  %s1937_s19 = smov 15  }
  0x60   :  { %2796 = vst [vmem:[#allocation25_spill] sm:$0xff] %v2037_v7  ;;  %128 = vst.msk [vmem:[#allocation2 + $0xd] sm:$0x3] %vm2025_vm1, %v2037_v7  ;;  %340 = vrot.lane.b32.xlu0 %v1704_v0, %s1936_s18  ;;  %589 = vrot.lane.b32.xlu1 %v1704_v0, %s1937_s19  ;;  %s1710_s20 = sld [smem:[#allocation12 + $0x6]]  ;;  %v178_v9 = vstv %s1708_s16  ;;  %s1938_s21 = smov 111   ;;  %vm189_vm2 = vcmask 1039360  }
  0x61   :  { %2797 = vst [vmem:[#allocation26_spill] sm:$0xff] %v2042_v8  ;;  %127 = vst.msk [vmem:[#allocation2 + $0x9] sm:$0x3] %vm2025_vm1, %v2042_v8  ;;  %s1939_s22 = smov 17   ;;  %s1711_s23 = sld [smem:[#allocation12 + $0x7]]  ;;  %vm592_vm3 = vcmask 121856  }
  0x62   :  { %v197_v14 = vstv %s1709_s17  ;;  %s1720_s24 = sld [smem:[#allocation12 + $0x10]]  ;;  %s1721_s25 = sld [smem:[#allocation12 + $0x11]]  ;;  %vm256_vm4 = vcmask 924672   ;;  %vm505_vm5 = vcmask 7168   ;;  %vm754_vm6 = vcmask 138240  }
  0x63   :  { %s1722_s26 = sld [smem:[#allocation12 + $0x12]]  ;;  %s1723_s0 = sld [smem:[#allocation12 + $0x13]]  ;;  %vm142_vm7 = vcmask 908288   ;;  %vm359_vm8 = vcmask 916480   ;;  %vm273_vm9 = vcmask 1031168   ;;  %vm688_vm10 = vcmask 777216  }
  0x64   :  { %139 = vrot.lane.b32.xlu1 %v1704_v0, %s1938_s21  ;;  %751 = vrot.lane.b32.xlu0 %v252_v2, %s1939_s22  ;;  %s1732_s2 = sld [smem:[#allocation12 + $0x1c]]  ;;  %s1733_s27 = sld [smem:[#allocation12 + $0x1d]]  ;;  %vm609_vm11 = vcmask 785408   ;;  %vm522_vm12 = vcmask 900096   ;;  %vm771_vm13 = vcmask 769024  }
  0x65   :  { %s1734_s28 = sld [smem:[#allocation12 + $0x1e]]  ;;  %s1735_s29 = sld [smem:[#allocation12 + $0x1f]] }
  0x66   :  { %v2050_v10 = vld [vmem:[#allocation2 + $0x4] sm:$0x7]  ;;  %v2052_v11 = vld [vmem:[#allocation2] sm:$0x7]  ;;  %v217_v18 = vstv %s1710_s20  ;;  %s1940_s30 = smov 95   ;;  %s1716_s7 = sld [smem:[#allocation12 + $0xc]] }
  0x67   :  { %v180_v12 = vmul.f32 %v178_v9, %v2050_v10  ;;  %v179_v13 = vmul.f32 %v178_v9, %v2052_v11  ;;  %v199_v15 = vmul.f32 %v197_v14, %v2050_v10  ;;  %v198_v16 = vmul.f32 %v197_v14, %v2052_v11  ;;  %v215_v17 = vld [vmem:[#allocation2 + $0xc] sm:$0x7]  ;;  %v425_v25 = vld [vmem:[#allocation2 + $0x5] sm:$0x3]  ;;  %v424_v27 = vld [vmem:[#allocation2 + $0x1] sm:$0x3] }
  0x68   :  { %v214_v19 = vld [vmem:[#allocation2 + $0x8] sm:$0x7]  ;;  %v219_v20 = vmul.f32 %v217_v18, %v215_v17  ;;  %v235_v22 = vstv %s1711_s23  ;;  %v427_v26 = vstv %s1720_s24  ;;  %v445_v30 = vstv %s1721_s25  ;;  %v463_v33 = vld [vmem:[#allocation2 + $0xd] sm:$0x3]  ;;  %v2072_v41 = vld [vmem:[#allocation2 + $0x5] sm:$0x7] }
  0x69   :  { %185 = vrot.lane.b32.xlu1 %v180_v12, %s1936_s18  ;;  %183 = vrot.lane.b32.xlu0 %v179_v13, %s1936_s18  ;;  %v218_v21 = vmul.f32 %v217_v18, %v214_v19  ;;  %v237_v23 = vmul.f32 %v235_v22, %v215_v17  ;;  %v236_v24 = vmul.f32 %v235_v22, %v214_v19  ;;  %v465_v34 = vstv %s1722_s26  ;;  %v462_v35 = vld [vmem:[#allocation2 + $0x9] sm:$0x3]  ;;  %v2074_v43 = vld [vmem:[#allocation2 + $0x1] sm:$0x7]  ;;  %v714_v49 = vld [vmem:[#allocation2 + $0xd] sm:$0x7] }
  0x6a   :  { %v429_v28 = vmul.f32 %v427_v26, %v425_v25  ;;  %v428_v29 = vmul.f32 %v427_v26, %v424_v27  ;;  %v447_v31 = vmul.f32 %v445_v30, %v425_v25  ;;  %v446_v32 = vmul.f32 %v445_v30, %v424_v27  ;;  %v713_v51 = vld [vmem:[#allocation2 + $0x9] sm:$0x7]  ;;  %s1717_s3 = sld [smem:[#allocation12 + $0xd]]  ;;  %v339_v60 = vld [vmem:[#allocation2 + $0x4] sm:$0x7]  ;;  %s1718_s8 = sld [smem:[#allocation12 + $0xe]] }
  0x6b   :  { %v467_v36 = vmul.f32 %v465_v34, %v463_v33  ;;  %v466_v37 = vmul.f32 %v465_v34, %v462_v35  ;;  %v483_v38 = vstv %s1723_s0  ;;  %v677_v42 = vstv %s1732_s2  ;;  %v338_v61 = vld [vmem:[#allocation2] sm:$0x7]  ;;  %v385_v14 = vld [vmem:[#allocation2 + $0xc] sm:$0x7]  ;;  %s1719_s9 = sld [smem:[#allocation12 + $0xf]]  ;;  %s1941_s10 = smov 112  }
  0x6c   :  { %v485_v39 = vmul.f32 %v483_v38, %v463_v33  ;;  %v484_v40 = vmul.f32 %v483_v38, %v462_v35  ;;  %v679_v44 = vmul.f32 %v677_v42, %v2072_v41  ;;  %v678_v45 = vmul.f32 %v677_v42, %v2074_v43  ;;  %s1728_s13 = sld [smem:[#allocation12 + $0x18]]  ;;  %v588_v27 = vld [vmem:[#allocation2 + $0x5] sm:$0x7]  ;;  %s1729_s1 = sld [smem:[#allocation12 + $0x19]]  ;;  %v634_v38 = vld [vmem:[#allocation2 + $0x9] sm:$0x7] }
  0x6d   :  { %204 = vrot.lane.b32.xlu1 %v199_v15, %s1936_s18  ;;  %202 = vrot.lane.b32.xlu0 %v198_v16, %s1936_s18  ;;  %v696_v46 = vstv %s1733_s27  ;;  %v716_v50 = vstv %s1734_s28  ;;  %v384_v15 = vld [vmem:[#allocation2 + $0x8] sm:$0x7]  ;;  %s1730_s14 = sld [smem:[#allocation12 + $0x1a]]  ;;  %s1731_s4 = sld [smem:[#allocation12 + $0x1b]] }
  0x6e   :  { %v698_v47 = vmul.f32 %v696_v46, %v2072_v41  ;;  %v697_v48 = vmul.f32 %v696_v46, %v2074_v43  ;;  %v718_v52 = vmul.f32 %v716_v50, %v714_v49  ;;  %v717_v53 = vmul.f32 %v716_v50, %v713_v51  ;;  %s1942_s5 = smov 96   ;;  %s1712_s15 = sld [smem:[#allocation12 + $0x8]] }
  0x6f   :  { %v734_v54 = vstv %s1735_s29  ;;  %v348_v0 = vstv %s1716_s7  ;;  %s1713_s16 = sld [smem:[#allocation12 + $0x9]]  ;;  %s1714_s17 = sld [smem:[#allocation12 + $0xa]] }
  0x70   :  { %v736_v55 = vmul.f32 %v734_v54, %v714_v49  ;;  %v735_v56 = vmul.f32 %v734_v54, %v713_v51  ;;  %v367_v13 = vstv %s1717_s3  ;;  %v389_v22 = vstv %s1718_s8  ;;  %s1715_s19 = sld [smem:[#allocation12 + $0xb]]  ;;  %s1943_s20 = smov 126  }
  0x71   :  { %224 = vrot.lane.b32.xlu1 %v219_v20, %s1936_s18  ;;  %222 = vrot.lane.b32.xlu0 %v218_v21, %s1936_s18  ;;  %v407_v26 = vstv %s1719_s9  ;;  %s1724_s23 = sld [smem:[#allocation12 + $0x14]]  ;;  %s1725_s24 = sld [smem:[#allocation12 + $0x15]] }
  0x72   :  { %v598_v33 = vstv %s1728_s13  ;;  %s1726_s25 = sld [smem:[#allocation12 + $0x16]]  ;;  %s1727_s26 = sld [smem:[#allocation12 + $0x17]] }
  0x73   :  { %v639_v46 = vstv %s1730_s14  ;;  %v657_v50 = vstv %s1731_s4  ;;  %s1944_s0 = smov 110   ;;  %s1736_s2 = sld [smem:[#allocation12 + $0x20]] }
  0x74   :  { %s1737_s27 = sld [smem:[#allocation12 + $0x21]]  ;;  %s1738_s28 = sld [smem:[#allocation12 + $0x22]] }
  0x75   :  { %242 = vrot.lane.b32.xlu1 %v237_v23, %s1936_s18  ;;  %240 = vrot.lane.b32.xlu0 %v236_v24, %s1936_s18  ;;  %s1739_s29 = sld [smem:[#allocation12 + $0x23]]  ;;  %s1945_s7 = smov 94  }
  0x76   :  { %s1706_s3 = sld [smem:[#allocation12 + $0x2]]  ;;  %s147_s8 = sld [smem:[#allocation12]] }
  0x77   :  { %s1705_s9 = sld [smem:[#allocation12 + $0x1]]  ;;  %s1707_s13 = sld [smem:[#allocation12 + $0x3]] }
  0x78   :  { %s2419_s14 = sld [smem:[#allocation13 + $0x1]]  ;;  %s1744_s4 = sld [smem:[#allocation9 + $0x4]] }
  0x79   :  { %434 = vrot.lane.b32.xlu1 %v429_v28, %s1938_s21  ;;  %432 = vrot.lane.b32.xlu0 %v428_v29, %s1938_s21  ;;  %v587_v28 = vld [vmem:[#allocation2 + $0x1] sm:$0x7] }
  0x7d   :  { %452 = vrot.lane.b32.xlu1 %v447_v31, %s1938_s21  ;;  %450 = vrot.lane.b32.xlu0 %v446_v32, %s1938_s21 }
  0x81   :  { %472 = vrot.lane.b32.xlu1 %v467_v36, %s1938_s21  ;;  %470 = vrot.lane.b32.xlu0 %v466_v37, %s1938_s21  ;;  %v617_v36 = vstv %s1729_s1  ;;  %v635_v37 = vld [vmem:[#allocation2 + $0xd] sm:$0x7]  ;;  %s2408_s1 = sld [smem:[#allocation13]] }
  0x85   :  { %490 = vrot.lane.b32.xlu1 %v485_v39, %s1938_s21  ;;  %488 = vrot.lane.b32.xlu0 %v484_v40, %s1938_s21 }
  0x89   :  { %684 = vrot.lane.b32.xlu1 %v679_v44, %s1940_s30  ;;  %682 = vrot.lane.b32.xlu0 %v678_v45, %s1940_s30 }
  0x8d   :  { %703 = vrot.lane.b32.xlu1 %v698_v47, %s1940_s30  ;;  %701 = vrot.lane.b32.xlu0 %v697_v48, %s1940_s30 }
  0x91   :  { %723 = vrot.lane.b32.xlu1 %v718_v52, %s1940_s30  ;;  %721 = vrot.lane.b32.xlu0 %v717_v53, %s1940_s30 }
  0x95   :  { %741 = vrot.lane.b32.xlu1 %v736_v55, %s1940_s30  ;;  %739 = vrot.lane.b32.xlu0 %v735_v56, %s1940_s30  ;;  %v262_v55 = vstv %s1712_s15  ;;  %s1745_s15 = sld [smem:[#allocation9 + $0x5]] }
  0xce   :  { %v2090_v57 = vpop.permute.xlu0 %253  ;;  %v2092_v62 = vpop.permute.xlu1 %502 }
  0xcf   :  { %v255_v45 = vrot.slane %v2090_v57, 7 }
  0xd1   :  { %v2121_v49 = vsel %vm256_vm4, %v255_v45, %v2090_v57 }
  0xd2   :  { %v341_v58 = vpop.permute.xlu0 %340  ;;  %v590_v16 = vpop.permute.xlu1 %589  ;;  %2800 = vst [vmem:[#allocation29_spill] sm:$0xff] %v2121_v49  ;;  %v260_v53 = vmul.f32 %v2121_v49, %v2050_v10  ;;  %v259_v54 = vmul.f32 %v2121_v49, %v2052_v11 }
  0xd3   :  { %v342_v59 = vrot.slane %v341_v58, 7  ;;  %v591_v21 = vrot.slane %v590_v16, 7 }
  0xd4   :  { %v264_v56 = vmul.f32 %v262_v55, %v260_v53  ;;  %v263_v57 = vmul.f32 %v262_v55, %v259_v54  ;;  %v779_v55 = vstv %s1737_s27  ;;  %s1771_s27 = sld [smem:[#allocation9 + $0x1f]] }
  0xd5   :  { %v2095_v63 = vsel %vm189_vm2, %v342_v59, %v341_v58  ;;  %v2105_v25 = vsel %vm592_vm3, %v591_v21, %v590_v16  ;;  %v281_v58 = vstv %s1713_s16  ;;  %v299_v59 = vld [vmem:[#allocation2 + $0xc] sm:$0x7]  ;;  %v500_v16 = vld [vmem:[#allocation2 + $0x1] sm:$0x7]  ;;  %s1746_s16 = sld [smem:[#allocation9 + $0x6]] }
  0xd6   :  { %2798 = vst [vmem:[#allocation27_spill] sm:$0xff] %v2095_v63  ;;  %v346_v2 = vmul.f32 %v2095_v63, %v339_v60  ;;  %v345_v5 = vmul.f32 %v2095_v63, %v338_v61  ;;  %v387_v19 = vmul.f32 %v385_v14, %v2095_v63  ;;  %v386_v20 = vmul.f32 %v384_v15, %v2095_v63  ;;  %v298_v60 = vld [vmem:[#allocation2 + $0x8] sm:$0x7]  ;;  %v501_v15 = vld [vmem:[#allocation2 + $0x5] sm:$0x7] }
  0xd7   :  { %2799 = vst [vmem:[#allocation28_spill] sm:$0xff] %v2105_v25  ;;  %v596_v31 = vmul.f32 %v2105_v25, %v588_v27  ;;  %v595_v32 = vmul.f32 %v2105_v25, %v587_v28  ;;  %v637_v42 = vmul.f32 %v635_v37, %v2105_v25  ;;  %v636_v44 = vmul.f32 %v634_v38, %v2105_v25 }
  0xd8   :  { %v350_v9 = vmul.f32 %v348_v0, %v346_v2  ;;  %v349_v12 = vmul.f32 %v348_v0, %v345_v5  ;;  %v369_v17 = vmul.f32 %v367_v13, %v346_v2  ;;  %v368_v18 = vmul.f32 %v367_v13, %v345_v5 }
  0xd9   :  { %v391_v23 = vmul.f32 %v389_v22, %v387_v19  ;;  %v390_v24 = vmul.f32 %v389_v22, %v386_v20  ;;  %v409_v29 = vmul.f32 %v407_v26, %v387_v19  ;;  %v408_v30 = vmul.f32 %v407_v26, %v386_v20 }
  0xda   :  { %355 = vrot.lane.b32.xlu1 %v350_v9, %s1941_s10  ;;  %353 = vrot.lane.b32.xlu0 %v349_v12, %s1941_s10  ;;  %v600_v34 = vmul.f32 %v598_v33, %v596_v31  ;;  %v599_v35 = vmul.f32 %v598_v33, %v595_v32  ;;  %v619_v39 = vmul.f32 %v617_v36, %v596_v31  ;;  %v504_v2 = vrot.slane %v2092_v62, 7 }
  0xdb   :  { %v618_v40 = vmul.f32 %v617_v36, %v595_v32  ;;  %v641_v47 = vmul.f32 %v639_v46, %v637_v42  ;;  %v640_v48 = vmul.f32 %v639_v46, %v636_v44  ;;  %v659_v51 = vmul.f32 %v657_v50, %v637_v42 }
  0xdc   :  { %v658_v52 = vmul.f32 %v657_v50, %v636_v44  ;;  %v283_v10 = vmul.f32 %v281_v58, %v260_v53  ;;  %v282_v61 = vmul.f32 %v281_v58, %v259_v54  ;;  %v301_v11 = vmul.f32 %v299_v59, %v2121_v49 }
  0xdd   :  { %v300_v0 = vmul.f32 %v298_v60, %v2121_v49  ;;  %v303_v5 = vstv %s1714_s17  ;;  %v2139_v13 = vsel %vm505_vm5, %v504_v2, %v2092_v62  ;;  %v321_v14 = vstv %s1715_s19  ;;  %s1747_s17 = sld [smem:[#allocation9 + $0x7]]  ;;  %s1756_s19 = sld [smem:[#allocation9 + $0x10]] }
  0xde   :  { %374 = vrot.lane.b32.xlu1 %v369_v17, %s1941_s10  ;;  %372 = vrot.lane.b32.xlu0 %v368_v18, %s1941_s10  ;;  %v305_v9 = vmul.f32 %v303_v5, %v301_v11  ;;  %2801 = vst [vmem:[#allocation30_spill] sm:$0xff] %v2139_v13  ;;  %v2143_v17 = vpop.permute.xlu1 %139  ;;  %v752_v18 = vpop.permute.xlu0 %751  ;;  %v323_v19 = vmul.f32 %v321_v14, %v301_v11  ;;  %v530_v28 = vstv %s1725_s24  ;;  %v552_v36 = vstv %s1726_s25  ;;  %s1758_s24 = sld [smem:[#allocation9 + $0x12]]  ;;  %s1759_s25 = sld [smem:[#allocation9 + $0x13]] }
  0xdf   :  { %v304_v12 = vmul.f32 %v303_v5, %v300_v0  ;;  %v322_v20 = vmul.f32 %v321_v14, %v300_v0  ;;  %v509_v21 = vmul.f32 %v2139_v13, %v501_v15  ;;  %v508_v22 = vmul.f32 %v2139_v13, %v500_v16 }
  0xe0   :  { %v570_v44 = vstv %s1727_s26  ;;  %s1768_s26 = sld [smem:[#allocation9 + $0x1c]] }
  0xe1   :  { %v532_v31 = vmul.f32 %v530_v28, %v509_v21  ;;  %v531_v32 = vmul.f32 %v530_v28, %v508_v22 }
  0xe2   :  { %396 = vrot.lane.b32.xlu1 %v391_v23, %s1941_s10  ;;  %394 = vrot.lane.b32.xlu0 %v390_v24, %s1941_s10  ;;  %v511_v23 = vstv %s1724_s23  ;;  %v2149_v26 = vpop.permute.xlu1 %185  ;;  %v2151_v27 = vpop.permute.xlu0 %183  ;;  %s1757_s23 = sld [smem:[#allocation9 + $0x11]] }
  0xe3   :  { %v513_v62 = vmul.f32 %v511_v23, %v509_v21  ;;  %v512_v24 = vmul.f32 %v511_v23, %v508_v22  ;;  %v187_v1 = vrot.slane %v2151_v27, 1 }
  0xe6   :  { %414 = vrot.lane.b32.xlu1 %v409_v29, %s1941_s10  ;;  %412 = vrot.lane.b32.xlu0 %v408_v30, %s1941_s10  ;;  %v548_v29 = vld [vmem:[#allocation2 + $0xd] sm:$0x7]  ;;  %v547_v30 = vld [vmem:[#allocation2 + $0x9] sm:$0x7]  ;;  %v2159_v37 = vpop.permute.xlu1 %204  ;;  %v2161_v38 = vpop.permute.xlu0 %202 }
  0xe7   :  { %v550_v33 = vmul.f32 %v548_v29, %v2139_v13  ;;  %v207_v3 = vrot.slane %v2159_v37, 1 }
  0xe9   :  { %v572_v45 = vmul.f32 %v570_v44, %v550_v33 }
  0xea   :  { %605 = vrot.lane.b32.xlu1 %v600_v34, %s1942_s5  ;;  %603 = vrot.lane.b32.xlu0 %v599_v35, %s1942_s5  ;;  %v549_v34 = vmul.f32 %v547_v30, %v2139_v13  ;;  %v753_v35 = vrot.slane %v752_v18, 7 }
  0xec   :  { %v2164_v42 = vsel %vm754_vm6, %v753_v35, %v752_v18  ;;  %v571_v46 = vmul.f32 %v570_v44, %v549_v34 }
  0xed   :  { %2802 = vst [vmem:[#allocation31_spill] sm:$0xff] %v2164_v42  ;;  %v757_v50 = vmul.f32 %v2164_v42, %v2074_v43 }
  0xee   :  { %624 = vrot.lane.b32.xlu1 %v619_v39, %s1942_s5  ;;  %622 = vrot.lane.b32.xlu0 %v618_v40, %s1942_s5  ;;  %v554_v39 = vmul.f32 %v552_v36, %v550_v33  ;;  %v553_v40 = vmul.f32 %v552_v36, %v549_v34 }
  0xef   :  { %v780_v59 = vmul.f32 %v779_v55, %v757_v50 }
  0xf2   :  { %646 = vrot.lane.b32.xlu1 %v641_v47, %s1942_s5  ;;  %644 = vrot.lane.b32.xlu0 %v640_v48, %s1942_s5  ;;  %v758_v47 = vmul.f32 %v2164_v42, %v2072_v41  ;;  %v2170_v48 = vpop.permute.xlu1 %224 }
  0xf4   :  { %v781_v58 = vmul.f32 %v779_v55, %v758_v47 }
  0xf6   :  { %664 = vrot.lane.b32.xlu1 %v659_v51, %s1942_s5  ;;  %662 = vrot.lane.b32.xlu0 %v658_v52, %s1942_s5  ;;  %v2174_v51 = vpop.permute.xlu0 %222  ;;  %v760_v52 = vstv %s1736_s2  ;;  %v2180_v41 = vpop.permute.xlu1 %242  ;;  %s1770_s2 = sld [smem:[#allocation9 + $0x1e]] }
  0xf7   :  { %v762_v53 = vmul.f32 %v760_v52, %v758_v47  ;;  %v761_v54 = vmul.f32 %v760_v52, %v757_v50  ;;  %v160_v47 = vld [vmem:[#allocation2 + $0xc] sm:$0x7]  ;;  %v130_v50 = vld [vmem:[#allocation2 + $0x4] sm:$0x7]  ;;  %v159_v52 = vld [vmem:[#allocation2 + $0x8] sm:$0x7] }
  0xfa   :  { %269 = vrot.lane.b32.xlu1 %v264_v56, %s1943_s20  ;;  %267 = vrot.lane.b32.xlu0 %v263_v57, %s1943_s20  ;;  %v797_v56 = vld [vmem:[#allocation2 + $0xd] sm:$0x7]  ;;  %v796_v57 = vld [vmem:[#allocation2 + $0x9] sm:$0x7]  ;;  %v2182_v43 = vpop.permute.xlu0 %240  ;;  %v2188_v11 = vpop.permute.xlu1 %434 }
  0xfb   :  { %v799_v60 = vmul.f32 %v797_v56, %v2164_v42 }
  0xfe   :  { %288 = vrot.lane.b32.xlu1 %v283_v10, %s1943_s20  ;;  %286 = vrot.lane.b32.xlu0 %v282_v61, %s1943_s20  ;;  %v798_v10 = vmul.f32 %v796_v57, %v2164_v42  ;;  %v801_v61 = vstv %s1738_s28  ;;  %v2190_v0 = vpop.permute.xlu0 %432  ;;  %v2194_v15 = vpop.permute.xlu1 %452  ;;  %v164_v57 = vstv %s1706_s3  ;;  %s1748_s28 = sld [smem:[#allocation9 + $0x8]]  ;;  %s1751_s3 = sld [smem:[#allocation9 + $0xb]] }
  0xff   :  { %v803_v2 = vmul.f32 %v801_v61, %v799_v60 }
 0x100   :  { %v802_v5 = vmul.f32 %v801_v61, %v798_v10 }
 0x102   :  { %310 = vrot.lane.b32.xlu1 %v305_v9, %s1943_s20  ;;  %308 = vrot.lane.b32.xlu0 %v304_v12, %s1943_s20  ;;  %v819_v9 = vstv %s1739_s29  ;;  %v2196_v16 = vpop.permute.xlu0 %450  ;;  %v2200_v18 = vpop.permute.xlu1 %472  ;;  %s1750_s29 = sld [smem:[#allocation9 + $0xa]] }
 0x103   :  { %v821_v12 = vmul.f32 %v819_v9, %v799_v60  ;;  %v820_v14 = vmul.f32 %v819_v9, %v798_v10  ;;  %v148_v10 = vstv %s147_s8  ;;  %s1752_s8 = sld [smem:[#allocation9 + $0xc]] }
 0x106   :  { %328 = vrot.lane.b32.xlu1 %v323_v19, %s1943_s20  ;;  %326 = vrot.lane.b32.xlu0 %v322_v20, %s1943_s20  ;;  %v2202_v19 = vpop.permute.xlu0 %470  ;;  %v2204_v20 = vpop.permute.xlu1 %490 }
 0x10a   :  { %518 = vrot.lane.b32.xlu1 %v513_v62, %s1944_s0  ;;  %516 = vrot.lane.b32.xlu0 %v512_v24, %s1944_s0  ;;  %v2206_v21 = vpop.permute.xlu0 %488  ;;  %v2208_v22 = vpop.permute.xlu1 %684 }
 0x10e   :  { %537 = vrot.lane.b32.xlu1 %v532_v31, %s1944_s0  ;;  %535 = vrot.lane.b32.xlu0 %v531_v32, %s1944_s0  ;;  %v2210_v23 = vpop.permute.xlu0 %682  ;;  %v2212_v62 = vpop.permute.xlu1 %703 }
 0x112   :  { %559 = vrot.lane.b32.xlu1 %v554_v39, %s1944_s0  ;;  %557 = vrot.lane.b32.xlu0 %v553_v40, %s1944_s0  ;;  %v2214_v24 = vpop.permute.xlu0 %701  ;;  %v2216_v28 = vpop.permute.xlu1 %723  ;;  %v141_v40 = vrot.slane %v2143_v17, 7 }
 0x116   :  { %577 = vrot.lane.b32.xlu1 %v572_v45, %s1944_s0  ;;  %575 = vrot.lane.b32.xlu0 %v571_v46, %s1944_s0  ;;  %v2218_v29 = vpop.permute.xlu0 %721  ;;  %v2220_v30 = vpop.permute.xlu1 %741  ;;  %v2243_v46 = vsel %vm142_vm7, %v141_v40, %v2143_v17 }
 0x117   :  { %2803 = vst [vmem:[#allocation32_spill] sm:$0xff] %v2243_v46  ;;  %v162_v56 = vmul.f32 %v160_v47, %v2243_v46 }
 0x119   :  { %v166_v9 = vmul.f32 %v164_v57, %v162_v56 }
 0x11a   :  { %767 = vrot.lane.b32.xlu1 %v762_v53, %s1945_s7  ;;  %765 = vrot.lane.b32.xlu0 %v761_v54, %s1945_s7  ;;  %v2222_v31 = vpop.permute.xlu0 %739  ;;  %v129_v53 = vld [vmem:[#allocation2] sm:$0x7] }
 0x11b   :  { %v145_v60 = vmul.f32 %v2243_v46, %v129_v53 }
 0x11d   :  { %v149_v47 = vmul.f32 %v148_v10, %v145_v60 }
 0x11e   :  { %786 = vrot.lane.b32.xlu1 %v781_v58, %s1945_s7  ;;  %784 = vrot.lane.b32.xlu0 %v780_v59, %s1945_s7  ;;  %v146_v58 = vmul.f32 %v2243_v46, %v130_v50  ;;  %v161_v59 = vmul.f32 %v159_v52, %v2243_v46  ;;  %v206_v46 = vrot.slane %v2161_v38, 1 }
 0x120   :  { %v165_v40 = vmul.f32 %v164_v57, %v161_v59 }
 0x122   :  { %808 = vrot.lane.b32.xlu1 %v803_v2, %s1945_s7  ;;  %806 = vrot.lane.b32.xlu0 %v802_v5, %s1945_s7  ;;  %v154_v2 = vstv %s1705_s9  ;;  %v170_v5 = vstv %s1707_s13  ;;  %v167_v57 = vadd.f32 %v165_v40, %v149_v47  ;;  %s1754_s9 = sld [smem:[#allocation9 + $0xe]]  ;;  %s1755_s13 = sld [smem:[#allocation9 + $0xf]] }
 0x123   :  { %v172_v50 = vmul.f32 %v170_v5, %v162_v56  ;;  %v156_v8 = vmul.f32 %v154_v2, %v146_v58  ;;  %v171_v52 = vmul.f32 %v170_v5, %v161_v59  ;;  %v155_v7 = vmul.f32 %v154_v2, %v145_v60 }
 0x124   :  { %v227_v59 = vrot.slane %v2170_v48, 1  ;;  %v226_v60 = vrot.slane %v2174_v51, 1 }
 0x125   :  { %v174_v56 = vadd.f32 %v172_v50, %v156_v8 }
 0x126   :  { %826 = vrot.lane.b32.xlu1 %v821_v12, %s1945_s7  ;;  %824 = vrot.lane.b32.xlu0 %v820_v14, %s1945_s7  ;;  %v188_v12 = vrot.slane %v2149_v26, 1  ;;  %v150_v14 = vmul.f32 %v148_v10, %v146_v58  ;;  %v190_v10 = vsel %vm189_vm2, %v2151_v27, %v187_v1  ;;  %v173_v58 = vadd.f32 %v171_v52, %v155_v7 }
 0x127   :  { %v244_v1 = vrot.slane %v2182_v43, 1  ;;  %v194_v7 = vadd.f32 %v190_v10, %v167_v57  ;;  %v229_v40 = vsel %vm189_vm2, %v2170_v48, %v227_v59  ;;  %v228_v47 = vsel %vm189_vm2, %v2174_v51, %v226_v60 }
 0x128   :  { %v168_v42 = vadd.f32 %v166_v9, %v150_v14  ;;  %v191_v25 = vsel %vm189_vm2, %v2149_v26, %v188_v12  ;;  %v209_v9 = vsel %vm189_vm2, %v2159_v37, %v207_v3  ;;  %v208_v26 = vsel %vm189_vm2, %v2161_v38, %v206_v46 }
 0x129   :  { %v245_v12 = vrot.slane %v2180_v41, 1  ;;  %v213_v27 = vadd.f32 %v209_v9, %v174_v56  ;;  %v212_v14 = vadd.f32 %v208_v26, %v173_v58  ;;  %v437_v37 = vrot.slane %v2188_v11, 7 }
 0x12a   :  { %v195_v8 = vadd.f32 %v191_v25, %v168_v42  ;;  %v436_v38 = vrot.slane %v2190_v0, 7  ;;  %v455_v25 = vrot.slane %v2194_v15, 7  ;;  %v246_v42 = vsel %vm189_vm2, %v2182_v43, %v244_v1 }
 0x12b   :  { %v247_v3 = vsel %vm189_vm2, %v2180_v41, %v245_v12  ;;  %v454_v46 = vrot.slane %v2196_v16, 7  ;;  %v475_v48 = vrot.slane %v2200_v18, 7  ;;  %v232_v57 = vadd.f32 %v228_v47, %v194_v7 }
 0x12c   :  { %v233_v51 = vadd.f32 %v229_v40, %v195_v8  ;;  %v251_v58 = vadd.f32 %v247_v3, %v213_v27  ;;  %v474_v41 = vrot.slane %v2202_v19, 7  ;;  %v493_v59 = vrot.slane %v2204_v20, 7 }
 0x12d   :  { %v250_v26 = vadd.f32 %v246_v42, %v212_v14  ;;  %v439_v43 = vsel %vm142_vm7, %v437_v37, %v2188_v11  ;;  %v438_v12 = vsel %vm142_vm7, %v436_v38, %v2190_v0  ;;  %v2302_v1 = vsel %vm142_vm7, %v455_v25, %v2194_v15 }
 0x12e   :  { %v2306_v8 = vsel %vm142_vm7, %v454_v46, %v2196_v16  ;;  %v2310_v7 = vsel %vm142_vm7, %v475_v48, %v2200_v18  ;;  %v2318_v15 = vsel %vm142_vm7, %v474_v41, %v2202_v19  ;;  %v2322_v16 = vsel %vm142_vm7, %v493_v59, %v2204_v20 }
 0x12f   :  { %v492_v18 = vrot.slane %v2206_v21, 7  ;;  %v687_v3 = vrot.slane %v2208_v22, 7 }
 0x14c   :  { %v2224_v32 = vpop.permute.xlu1 %355  ;;  %v2226_v33 = vpop.permute.xlu0 %353 }
 0x14d   :  { %v358_v27 = vrot.slane %v2224_v32, 1  ;;  %v357_v14 = vrot.slane %v2226_v33, 1 }
 0x14f   :  { %v361_v19 = vsel %vm359_vm8, %v2224_v32, %v358_v27  ;;  %v360_v20 = vsel %vm359_vm8, %v2226_v33, %v357_v14 }
 0x150   :  { %v2228_v34 = vpop.permute.xlu1 %374  ;;  %v2230_v35 = vpop.permute.xlu0 %372 }
 0x151   :  { %v377_v13 = vrot.slane %v2228_v34, 1  ;;  %v376_v63 = vrot.slane %v2230_v35, 1 }
 0x154   :  { %v2232_v36 = vpop.permute.xlu1 %396  ;;  %v2234_v39 = vpop.permute.xlu0 %394 }
 0x158   :  { %v2237_v44 = vpop.permute.xlu1 %414  ;;  %v2239_v45 = vpop.permute.xlu0 %412 }
 0x15c   :  { %v2245_v54 = vpop.permute.xlu1 %605  ;;  %v2247_v55 = vpop.permute.xlu0 %603 }
 0x160   :  { %v2253_v17 = vpop.permute.xlu1 %624  ;;  %v2255_v61 = vpop.permute.xlu0 %622 }
 0x164   :  { %v2259_v53 = vpop.permute.xlu1 %646  ;;  %v2261_v6 = vpop.permute.xlu0 %644 }
 0x168   :  { %v2271_v2 = vpop.permute.xlu1 %664  ;;  %v2273_v5 = vpop.permute.xlu0 %662 }
 0x16c   :  { %v270_v50 = vpop.permute.xlu1 %269  ;;  %v268_v52 = vpop.permute.xlu0 %267 }
 0x16d   :  { %v272_v10 = vrot.slane %v270_v50, 1  ;;  %v271_v56 = vrot.slane %v268_v52, 1 }
 0x16f   :  { %v275_v11 = vsel %vm273_vm9, %v270_v50, %v272_v10  ;;  %v274_v0 = vsel %vm273_vm9, %v268_v52, %v271_v56  ;;  %v399_v50 = vrot.slane %v2232_v36, 1  ;;  %v398_v52 = vrot.slane %v2234_v39, 1 }
 0x170   :  { %v289_v60 = vpop.permute.xlu1 %288  ;;  %v287_v9 = vpop.permute.xlu0 %286  ;;  %v279_v46 = vadd.f32 %v275_v11, %v233_v51  ;;  %v278_v48 = vadd.f32 %v274_v0, %v232_v57 }
 0x171   :  { %v291_v40 = vrot.slane %v289_v60, 1  ;;  %v290_v47 = vrot.slane %v287_v9, 1  ;;  %v401_v33 = vsel %vm359_vm8, %v2232_v36, %v399_v50  ;;  %v400_v51 = vsel %vm359_vm8, %v2234_v39, %v398_v52 }
 0x172   :  { %v686_v52 = vrot.slane %v2210_v23, 7 }
 0x173   :  { %v293_v10 = vsel %vm273_vm9, %v289_v60, %v291_v40  ;;  %v292_v56 = vsel %vm273_vm9, %v287_v9, %v290_v47  ;;  %v417_v40 = vrot.slane %v2237_v44, 1  ;;  %v416_v47 = vrot.slane %v2239_v45, 1 }
 0x174   :  { %v311_v37 = vpop.permute.xlu1 %310  ;;  %v309_v38 = vpop.permute.xlu0 %308  ;;  %v297_v9 = vadd.f32 %v293_v10, %v251_v58  ;;  %v296_v14 = vadd.f32 %v292_v56, %v250_v26  ;;  %v706_v58 = vrot.slane %v2212_v62, 7  ;;  %v378_v26 = vsel %vm359_vm8, %v2230_v35, %v376_v63 }
 0x175   :  { %v313_v25 = vrot.slane %v311_v37, 1  ;;  %v312_v42 = vrot.slane %v309_v38, 1  ;;  %v419_v10 = vsel %vm359_vm8, %v2237_v44, %v417_v40  ;;  %v418_v56 = vsel %vm359_vm8, %v2239_v45, %v416_v47 }
 0x176   :  { %v494_v35 = vsel %vm142_vm7, %v492_v18, %v2206_v21  ;;  %v689_v44 = vsel %vm688_vm10, %v686_v52, %v2210_v23  ;;  %v705_v21 = vrot.slane %v2214_v24, 7 }
 0x177   :  { %v315_v41 = vsel %vm273_vm9, %v311_v37, %v313_v25  ;;  %v314_v59 = vsel %vm273_vm9, %v309_v38, %v312_v42 }
 0x178   :  { %v319_v49 = vadd.f32 %v315_v41, %v279_v46  ;;  %v318_v32 = vadd.f32 %v314_v59, %v278_v48  ;;  %v329_v27 = vpop.permute.xlu1 %328  ;;  %v327_v4 = vpop.permute.xlu0 %326  ;;  %v608_v41 = vrot.slane %v2245_v54, 7  ;;  %v607_v59 = vrot.slane %v2247_v55, 7 }
 0x179   :  { %v331_v57 = vrot.slane %v329_v27, 1  ;;  %v330_v60 = vrot.slane %v327_v4, 1 }
 0x17a   :  { %v365_v11 = vadd.f32 %v361_v19, %v319_v49  ;;  %v364_v0 = vadd.f32 %v360_v20, %v318_v32  ;;  %v379_v49 = vsel %vm359_vm8, %v2228_v34, %v377_v13  ;;  %v610_v23 = vsel %vm609_vm11, %v607_v59, %v2247_v55 }
 0x17b   :  { %v333_v37 = vsel %vm273_vm9, %v329_v27, %v331_v57  ;;  %v332_v38 = vsel %vm273_vm9, %v327_v4, %v330_v60  ;;  %v2370_v60 = vsel %vm688_vm10, %v706_v58, %v2212_v62  ;;  %v627_v55 = vrot.slane %v2253_v17, 7 }
 0x17c   :  { %v405_v25 = vadd.f32 %v401_v33, %v365_v11  ;;  %v404_v42 = vadd.f32 %v400_v51, %v364_v0  ;;  %v337_v36 = vadd.f32 %v333_v37, %v297_v9  ;;  %v336_v50 = vadd.f32 %v332_v38, %v296_v14  ;;  %v519_v46 = vpop.permute.xlu1 %518  ;;  %v517_v39 = vpop.permute.xlu0 %516 }
 0x17d   :  { %v521_v13 = vrot.slane %v519_v46, 7  ;;  %v520_v34 = vrot.slane %v517_v39, 7  ;;  %v626_v37 = vrot.slane %v2255_v61, 7 }
 0x17e   :  { %v383_v19 = vadd.f32 %v379_v49, %v337_v36  ;;  %v382_v20 = vadd.f32 %v378_v26, %v336_v50  ;;  %v443_v48 = vadd.f32 %v439_v43, %v405_v25  ;;  %v442_v4 = vadd.f32 %v438_v12, %v404_v42 }
 0x17f   :  { %v690_v43 = vsel %vm688_vm10, %v687_v3, %v2208_v22  ;;  %v611_v22 = vsel %vm609_vm11, %v608_v41, %v2245_v54 }
 0x180   :  { %v423_v32 = vadd.f32 %v419_v10, %v383_v19  ;;  %v422_v27 = vadd.f32 %v418_v56, %v382_v20  ;;  %v538_v33 = vpop.permute.xlu1 %537  ;;  %v536_v63 = vpop.permute.xlu0 %535  ;;  %v481_v45 = vadd.f32 %v2310_v7, %v443_v48  ;;  %v480_v12 = vadd.f32 %v2318_v15, %v442_v4 }
 0x181   :  { %v649_v7 = vrot.slane %v2259_v53, 7  ;;  %v648_v15 = vrot.slane %v2261_v6, 7  ;;  %v540_v62 = vrot.slane %v538_v33, 7  ;;  %v539_v9 = vrot.slane %v536_v63, 7 }
 0x182   :  { %v461_v51 = vadd.f32 %v2302_v1, %v423_v32  ;;  %v460_v57 = vadd.f32 %v2306_v8, %v422_v27  ;;  %v524_v1 = vsel %vm522_vm12, %v521_v13, %v519_v46  ;;  %v523_v8 = vsel %vm522_vm12, %v520_v34, %v517_v39 }
 0x183   :  { %v528_v0 = vadd.f32 %v524_v1, %v481_v45  ;;  %v527_v40 = vadd.f32 %v523_v8, %v480_v12  ;;  %v651_v42 = vsel %vm609_vm11, %v649_v7, %v2259_v53  ;;  %v650_v36 = vsel %vm609_vm11, %v648_v15, %v2261_v6 }
 0x184   :  { %v560_v18 = vpop.permute.xlu1 %559  ;;  %v558_v3 = vpop.permute.xlu0 %557  ;;  %v499_v54 = vadd.f32 %v2322_v16, %v461_v51  ;;  %v498_v47 = vadd.f32 %v494_v35, %v460_v57  ;;  %v542_v16 = vsel %vm522_vm12, %v540_v62, %v538_v33  ;;  %v541_v58 = vsel %vm522_vm12, %v539_v9, %v536_v63 }
 0x185   :  { %v562_v14 = vrot.slane %v560_v18, 7  ;;  %v561_v11 = vrot.slane %v558_v3, 7  ;;  %v667_v10 = vrot.slane %v2271_v2, 7  ;;  %v666_v53 = vrot.slane %v2273_v5, 7 }
 0x186   :  { %v546_v19 = vadd.f32 %v542_v16, %v499_v54  ;;  %v545_v20 = vadd.f32 %v541_v58, %v498_v47  ;;  %v726_v33 = vrot.slane %v2216_v28, 7  ;;  %v725_v63 = vrot.slane %v2218_v29, 7 }
 0x187   :  { %v564_v38 = vsel %vm522_vm12, %v562_v14, %v560_v18  ;;  %v563_v25 = vsel %vm522_vm12, %v561_v11, %v558_v3  ;;  %v629_v35 = vsel %vm609_vm11, %v627_v55, %v2253_v17  ;;  %v628_v45 = vsel %vm609_vm11, %v626_v37, %v2255_v61 }
 0x188   :  { %v568_v50 = vadd.f32 %v564_v38, %v528_v0  ;;  %v567_v46 = vadd.f32 %v563_v25, %v527_v40  ;;  %v578_v39 = vpop.permute.xlu1 %577  ;;  %v576_v52 = vpop.permute.xlu0 %575  ;;  %v743_v7 = vrot.slane %v2222_v31, 7  ;;  %v669_v15 = vsel %vm609_vm11, %v667_v10, %v2271_v2 }
 0x189   :  { %v580_v49 = vrot.slane %v578_v39, 7  ;;  %v579_v26 = vrot.slane %v576_v52, 7  ;;  %v668_v1 = vsel %vm609_vm11, %v666_v53, %v2273_v5  ;;  %v727_v2 = vsel %vm688_vm10, %v725_v63, %v2218_v29  ;;  %v115_v63 = vld [vmem:[#allocation3 + $0x2] ss:$4 sm:$0x3] }
 0x18a   :  { %v615_v48 = vadd.f32 %v611_v22, %v568_v50  ;;  %v614_v4 = vadd.f32 %v610_v23, %v567_v46  ;;  %v744_v23 = vrot.slane %v2220_v30, 7 }
 0x18b   :  { %v582_v6 = vsel %vm522_vm12, %v580_v49, %v578_v39  ;;  %v581_v56 = vsel %vm522_vm12, %v579_v26, %v576_v52 }
 0x18c   :  { %v655_v41 = vadd.f32 %v651_v42, %v615_v48  ;;  %v654_v59 = vadd.f32 %v650_v36, %v614_v4  ;;  %v586_v32 = vadd.f32 %v582_v6, %v546_v19  ;;  %v585_v27 = vadd.f32 %v581_v56, %v545_v20  ;;  %v768_v13 = vpop.permute.xlu1 %767  ;;  %v766_v34 = vpop.permute.xlu0 %765 }
 0x18d   :  { %v770_v18 = vrot.slane %v768_v13, 7  ;;  %v769_v61 = vrot.slane %v766_v34, 7  ;;  %v746_v0 = vsel %vm688_vm10, %v744_v23, %v2220_v30  ;;  %v841_v6 = vstv %s2419_s14  ;;  %s1762_s14 = sld [smem:[#allocation9 + $0x16]] }
 0x18e   :  { %v633_v12 = vadd.f32 %v629_v35, %v586_v32  ;;  %v632_v51 = vadd.f32 %v628_v45, %v585_v27  ;;  %v694_v57 = vadd.f32 %v690_v43, %v655_v41  ;;  %v693_v22 = vadd.f32 %v689_v44, %v654_v59  ;;  %v117_v27 = vld [vmem:[#allocation3 + $0xa] ss:$4 sm:$0x3] }
 0x18f   :  { %v707_v43 = vsel %vm688_vm10, %v705_v21, %v2214_v24  ;;  %v728_v44 = vsel %vm688_vm10, %v726_v33, %v2216_v28  ;;  %v745_v24 = vsel %vm688_vm10, %v743_v7, %v2222_v31  ;;  %v773_v28 = vsel %vm771_vm13, %v770_v18, %v768_v13 }
 0x190   :  { %v673_v17 = vadd.f32 %v669_v15, %v633_v12  ;;  %v672_v8 = vadd.f32 %v668_v1, %v632_v51  ;;  %v787_v3 = vpop.permute.xlu1 %786  ;;  %v785_v62 = vpop.permute.xlu0 %784  ;;  %v732_v5 = vadd.f32 %v728_v44, %v694_v57  ;;  %v731_v9 = vadd.f32 %v727_v2, %v693_v22  ;;  %v121_v22 = vld [vmem:[#allocation3 + $0xb] ss:$4 sm:$0x3]  ;;  %v119_v1 = vld [vmem:[#allocation3 + $0x3] ss:$4 sm:$0x3] }
 0x191   :  { %v772_v21 = vsel %vm771_vm13, %v769_v61, %v766_v34  ;;  %v789_v54 = vrot.slane %v787_v3, 7  ;;  %v788_v47 = vrot.slane %v785_v62, 7  ;;  %v837_v31 = vstv %s2408_s1  ;;  %s1760_s1 = sld [smem:[#allocation9 + $0x14]] }
 0x192   :  { %v712_v14 = vadd.f32 %v2370_v60, %v673_v17  ;;  %v711_v11 = vadd.f32 %v707_v43, %v672_v8  ;;  %v777_v37 = vadd.f32 %v773_v28, %v732_v5  ;;  %v776_v38 = vadd.f32 %v772_v21, %v731_v9 }
 0x193   :  { %v791_v16 = vsel %vm771_vm13, %v789_v54, %v787_v3  ;;  %v790_v58 = vsel %vm771_vm13, %v788_v47, %v785_v62  ;;  %v911_v43 = vstv %s1744_s4  ;;  %v949_v28 = vstv %s1746_s16  ;;  %s1763_s4 = sld [smem:[#allocation9 + $0x17]]  ;;  %s1766_s16 = sld [smem:[#allocation9 + $0x1a]] }
 0x194   :  { %v809_v29 = vpop.permute.xlu1 %808  ;;  %v807_v40 = vpop.permute.xlu0 %806  ;;  %v750_v25 = vadd.f32 %v746_v0, %v712_v14  ;;  %v749_v42 = vadd.f32 %v745_v24, %v711_v11  ;;  %v929_v14 = vstv %s1745_s15  ;;  %v967_v54 = vstv %s1747_s17  ;;  %s1764_s15 = sld [smem:[#allocation9 + $0x18]]  ;;  %s1767_s17 = sld [smem:[#allocation9 + $0x1b]] }
 0x195   :  { %v811_v55 = vrot.slane %v809_v29, 7  ;;  %v810_v60 = vrot.slane %v807_v40, 7 }
 0x196   :  { %v795_v19 = vadd.f32 %v791_v16, %v750_v25  ;;  %v794_v20 = vadd.f32 %v790_v58, %v749_v42  ;;  %v1201_v58 = vstv %s1759_s25  ;;  %s2561_s25 = sld [smem:[#allocation9 + $0x22]] }
 0x197   :  { %v813_v30 = vsel %vm771_vm13, %v811_v55, %v809_v29  ;;  %v812_v36 = vsel %vm771_vm13, %v810_v60, %v807_v40 }
 0x198   :  { %v817_v50 = vadd.f32 %v813_v30, %v777_v37  ;;  %v816_v46 = vadd.f32 %v812_v36, %v776_v38  ;;  %v827_v39 = vpop.permute.xlu1 %826  ;;  %v825_v52 = vpop.permute.xlu0 %824  ;;  %v1145_v37 = vstv %s1756_s19  ;;  %v1163_v30 = vstv %s1757_s23  ;;  %s1772_s19 = sld [smem:[#allocation9 + $0x20]]  ;;  %s2553_s23 = sld [smem:[#allocation9 + $0x2]] }
 0x199   :  { %v829_v49 = vrot.slane %v827_v39, 7  ;;  %v828_v26 = vrot.slane %v825_v52, 7 }
 0x19a   :  { %v839_v48 = vadd.f32 %v837_v31, %v817_v50  ;;  %v838_v4 = vadd.f32 %v837_v31, %v816_v46  ;;  %v1183_v46 = vstv %s1758_s24  ;;  %s2559_s24 = sld [smem:[#allocation9]] }
 0x19b   :  { %v831_v10 = vsel %vm771_vm13, %v829_v49, %v827_v39  ;;  %v830_v53 = vsel %vm771_vm13, %v828_v26, %v825_v52 }
 0x19c   :  { %v835_v56 = vadd.f32 %v831_v10, %v795_v19  ;;  %v834_v41 = vadd.f32 %v830_v53, %v794_v20  ;;  %848 = vrot.lane.b32.xlu1 %v839_v48, %s1939_s22  ;;  %846 = vrot.lane.b32.xlu0 %v838_v4, %s1939_s22  ;;  %v1381_v20 = vstv %s1768_s26  ;;  %s2565_s26 = sld [smem:[#allocation9 + $0x3]] }
 0x19e   :  { %v843_v59 = vadd.f32 %v841_v6, %v835_v56  ;;  %v842_v32 = vadd.f32 %v841_v6, %v834_v41 }
 0x1a0   :  { %862 = vrot.lane.b32.xlu1 %v843_v59, %s1939_s22  ;;  %860 = vrot.lane.b32.xlu0 %v842_v32, %s1939_s22  ;;  %v1419_v59 = vstv %s1770_s2  ;;  %s1776_s2 = sld [smem:[#allocation10 + $0x1]] }
 0x20e   :  { %v849_v13 = vpop.permute.xlu1 %848  ;;  %v847_v34 = vpop.permute.xlu0 %846 }
 0x20f   :  { %v851_v33 = vrot.slane %v849_v13, 1  ;;  %v850_v35 = vrot.slane %v847_v34, 1 }
 0x211   :  { %v853_v45 = vsel %vm754_vm6, %v849_v13, %v851_v33  ;;  %v852_v12 = vsel %vm754_vm6, %v847_v34, %v850_v35  ;;  %v1437_v34 = vstv %s1771_s27  ;;  %v2805_v33 = vld [vmem:[#allocation29_spill] sm:$0xff] }
 0x212   :  { %v2441_v51 = vsub.f32 %v117_v27, %v853_v45  ;;  %v2443_v57 = vsub.f32 %v115_v63, %v852_v12  ;;  %v863_v23 = vpop.permute.xlu1 %862  ;;  %v861_v7 = vpop.permute.xlu0 %860 }
 0x213   :  { %v865_v15 = vrot.slane %v863_v23, 1  ;;  %v864_v17 = vrot.slane %v861_v7, 1 }
 0x214   :  { %873 = vst.msk [vmem:[#allocation2 + $0x5] sm:$0x3] %vm2025_vm1, %v2441_v51  ;;  %872 = vst.msk [vmem:[#allocation2 + $0x1] sm:$0x3] %vm2025_vm1, %v2443_v57 }
 0x215   :  { %v867_v18 = vsel %vm754_vm6, %v863_v23, %v865_v15  ;;  %v866_v61 = vsel %vm754_vm6, %v861_v7, %v864_v17 }
 0x216   :  { %v2453_v3 = vsub.f32 %v121_v22, %v867_v18  ;;  %v2455_v62 = vsub.f32 %v119_v1, %v866_v61  ;;  %v987_v22 = vstv %s1748_s28 }
 0x218   :  { %875 = vst.msk [vmem:[#allocation2 + $0xd] sm:$0x3] %vm2025_vm1, %v2453_v3  ;;  %874 = vst.msk [vmem:[#allocation2 + $0x9] sm:$0x3] %vm2025_vm1, %v2455_v62 }
 0x21b   :  { %v2463_v44 = vld [vmem:[#allocation2 + $0x4] sm:$0x7]  ;;  %v2465_v2 = vld [vmem:[#allocation2] sm:$0x7] }
 0x21c   :  { %v913_v5 = vmul.f32 %v911_v43, %v2463_v44  ;;  %v912_v9 = vmul.f32 %v911_v43, %v2465_v2  ;;  %v931_v11 = vmul.f32 %v929_v14, %v2463_v44  ;;  %v930_v0 = vmul.f32 %v929_v14, %v2465_v2  ;;  %v1143_v60 = vld [vmem:[#allocation2 + $0x5] sm:$0x3]  ;;  %v1142_v38 = vld [vmem:[#allocation2 + $0x1] sm:$0x3] }
 0x21d   :  { %v1147_v25 = vmul.f32 %v1145_v37, %v1143_v60  ;;  %v1146_v42 = vmul.f32 %v1145_v37, %v1142_v38  ;;  %v1165_v36 = vmul.f32 %v1163_v30, %v1143_v60  ;;  %v1164_v31 = vmul.f32 %v1163_v30, %v1142_v38  ;;  %v2485_v19 = vld [vmem:[#allocation2 + $0x5] sm:$0x7]  ;;  %v2487_v48 = vld [vmem:[#allocation2 + $0x1] sm:$0x7] }
 0x21e   :  { %918 = vrot.lane.b32.xlu1 %v913_v5, %s1936_s18  ;;  %916 = vrot.lane.b32.xlu0 %v912_v9, %s1936_s18  ;;  %v1383_v4 = vmul.f32 %v1381_v20, %v2485_v19  ;;  %v1382_v10 = vmul.f32 %v1381_v20, %v2487_v48  ;;  %v985_v63 = vmul.f32 %v2463_v44, %v2805_v33  ;;  %v1027_v44 = vstv %s1750_s29  ;;  %v1063_v14 = vld [vmem:[#allocation2 + $0x4] sm:$0x7] }
 0x21f   :  { %v947_v24 = vld [vmem:[#allocation2 + $0xc] sm:$0x7]  ;;  %v946_v21 = vld [vmem:[#allocation2 + $0x8] sm:$0x7]  ;;  %v984_v35 = vmul.f32 %v2465_v2, %v2805_v33  ;;  %v1045_v9 = vstv %s1751_s3 }
 0x220   :  { %v951_v29 = vmul.f32 %v949_v28, %v947_v24  ;;  %v950_v40 = vmul.f32 %v949_v28, %v946_v21  ;;  %v969_v47 = vmul.f32 %v967_v54, %v947_v24  ;;  %v968_v55 = vmul.f32 %v967_v54, %v946_v21  ;;  %v1181_v50 = vld [vmem:[#allocation2 + $0xd] sm:$0x3]  ;;  %v1180_v39 = vld [vmem:[#allocation2 + $0x9] sm:$0x3]  ;;  %v2806_v28 = vld [vmem:[#allocation27_spill] sm:$0xff] }
 0x221   :  { %v1185_v52 = vmul.f32 %v1183_v46, %v1181_v50  ;;  %v1184_v16 = vmul.f32 %v1183_v46, %v1180_v39  ;;  %v1203_v49 = vmul.f32 %v1201_v58, %v1181_v50  ;;  %v1202_v26 = vmul.f32 %v1201_v58, %v1180_v39  ;;  %v1417_v41 = vld [vmem:[#allocation2 + $0xd] sm:$0x7]  ;;  %v1416_v32 = vld [vmem:[#allocation2 + $0x9] sm:$0x7]  ;;  %v1219_v39 = vld [vmem:[#allocation2 + $0x5] sm:$0x7] }
 0x222   :  { %936 = vrot.lane.b32.xlu1 %v931_v11, %s1936_s18  ;;  %934 = vrot.lane.b32.xlu0 %v930_v0, %s1936_s18  ;;  %v1421_v27 = vmul.f32 %v1419_v59, %v1417_v41  ;;  %v1420_v13 = vmul.f32 %v1419_v59, %v1416_v32  ;;  %v1439_v45 = vmul.f32 %v1437_v34, %v1417_v41  ;;  %v1023_v1 = vld [vmem:[#allocation2 + $0xc] sm:$0x7]  ;;  %v1022_v17 = vld [vmem:[#allocation2 + $0x8] sm:$0x7]  ;;  %v1062_v11 = vld [vmem:[#allocation2] sm:$0x7]  ;;  %v1125_v46 = vstv %s1755_s13 }
 0x223   :  { %v1438_v12 = vmul.f32 %v1437_v34, %v1416_v32  ;;  %v989_v23 = vmul.f32 %v987_v22, %v985_v63  ;;  %v988_v7 = vmul.f32 %v987_v22, %v984_v35  ;;  %v1025_v61 = vmul.f32 %v1023_v1, %v2805_v33  ;;  %v1103_v60 = vld [vmem:[#allocation2 + $0xc] sm:$0x7]  ;;  %v1102_v37 = vld [vmem:[#allocation2 + $0x8] sm:$0x7] }
 0x224   :  { %v1024_v43 = vmul.f32 %v1022_v17, %v2805_v33  ;;  %v1065_v21 = vmul.f32 %v1063_v14, %v2806_v28  ;;  %v1104_v30 = vmul.f32 %v1102_v37, %v2806_v28  ;;  %v1258_v41 = vld [vmem:[#allocation2 + $0x9] sm:$0x7]  ;;  %v1263_v34 = vstv %s1762_s14 }
 0x225   :  { %v1029_v2 = vmul.f32 %v1027_v44, %v1025_v61  ;;  %v1047_v0 = vmul.f32 %v1045_v9, %v1025_v61  ;;  %v1303_v17 = vstv %s1764_s15 }
 0x226   :  { %956 = vrot.lane.b32.xlu1 %v951_v29, %s1936_s18  ;;  %954 = vrot.lane.b32.xlu0 %v950_v40, %s1936_s18  ;;  %v1028_v5 = vmul.f32 %v1027_v44, %v1024_v43  ;;  %v1046_v24 = vmul.f32 %v1045_v9, %v1024_v43  ;;  %v1064_v29 = vmul.f32 %v1062_v11, %v2806_v28  ;;  %v1067_v40 = vstv %s1752_s8  ;;  %v1339_v43 = vld [vmem:[#allocation2 + $0xd] sm:$0x7]  ;;  %v1338_v44 = vld [vmem:[#allocation2 + $0x9] sm:$0x7] }
 0x227   :  { %v1069_v54 = vmul.f32 %v1067_v40, %v1065_v21  ;;  %v1126_v58 = vmul.f32 %v1125_v46, %v1104_v30  ;;  %v1343_v11 = vstv %s1766_s16 }
 0x22a   :  { %974 = vrot.lane.b32.xlu1 %v969_v47, %s1936_s18  ;;  %972 = vrot.lane.b32.xlu0 %v968_v55, %s1936_s18  ;;  %s1769_s18 = sld [smem:[#allocation9 + $0x1d]]  ;;  %v1068_v47 = vmul.f32 %v1067_v40, %v1064_v29 }
 0x22e   :  { %1152 = vrot.lane.b32.xlu1 %v1147_v25, %s1938_s21  ;;  %1150 = vrot.lane.b32.xlu0 %v1146_v42, %s1938_s21  ;;  %v1105_v42 = vmul.f32 %v1103_v60, %v2806_v28  ;;  %v1361_v28 = vstv %s1767_s17  ;;  %v893_v60 = vld [vmem:[#allocation2 + $0xc] sm:$0x7] }
 0x230   :  { %v1399_v53 = vstv %s1769_s18  ;;  %s2568_s18 = sld [smem:[#allocation9 + $0x23]] }
 0x231   :  { %v1401_v6 = vmul.f32 %v1399_v53, %v2485_v19  ;;  %v1400_v56 = vmul.f32 %v1399_v53, %v2487_v48 }
 0x232   :  { %1170 = vrot.lane.b32.xlu1 %v1165_v36, %s1938_s21  ;;  %1168 = vrot.lane.b32.xlu0 %v1164_v31, %s1938_s21  ;;  %v1107_v36 = vstv %s1754_s9 }
 0x233   :  { %v1109_v31 = vmul.f32 %v1107_v36, %v1105_v42  ;;  %v1108_v50 = vmul.f32 %v1107_v36, %v1104_v30  ;;  %v1492_v30 = vld [vmem:[#allocation2 + $0x9] sm:$0x7] }
 0x234   :  { %v2810_v36 = vld [vmem:[#allocation32_spill] sm:$0xff] }
 0x236   :  { %1190 = vrot.lane.b32.xlu1 %v1185_v52, %s1938_s21  ;;  %1188 = vrot.lane.b32.xlu0 %v1184_v16, %s1938_s21  ;;  %v1218_v52 = vld [vmem:[#allocation2 + $0x1] sm:$0x7]  ;;  %v1127_v16 = vmul.f32 %v1125_v46, %v1105_v42  ;;  %v1493_v42 = vld [vmem:[#allocation2 + $0xd] sm:$0x7]  ;;  %v897_v46 = vstv %s2553_s23 }
 0x23a   :  { %1208 = vrot.lane.b32.xlu1 %v1203_v49, %s1938_s21  ;;  %1206 = vrot.lane.b32.xlu0 %v1202_v26, %s1938_s21  ;;  %s1749_s21 = sld [smem:[#allocation9 + $0x9]]  ;;  %v2807_v49 = vld [vmem:[#allocation30_spill] sm:$0xff] }
 0x23b   :  { %v1221_v26 = vmul.f32 %v1219_v39, %v2807_v49  ;;  %v1220_v20 = vmul.f32 %v1218_v52, %v2807_v49  ;;  %v876_v39 = vld [vmem:[#allocation2] sm:$0x7] }
 0x23e   :  { %1388 = vrot.lane.b32.xlu1 %v1383_v4, %s1940_s30  ;;  %1386 = vrot.lane.b32.xlu0 %v1382_v10, %s1940_s30  ;;  %v1223_v4 = vstv %s1760_s1 }
 0x23f   :  { %v1225_v10 = vmul.f32 %v1223_v4, %v1221_v26  ;;  %v1224_v53 = vmul.f32 %v1223_v4, %v1220_v20 }
 0x240   :  { %v1005_v15 = vstv %s1749_s21 }
 0x241   :  { %v1007_v8 = vmul.f32 %v1005_v15, %v985_v63  ;;  %v1006_v18 = vmul.f32 %v1005_v15, %v984_v35  ;;  %v1281_v35 = vstv %s1763_s4 }
 0x242   :  { %1406 = vrot.lane.b32.xlu1 %v1401_v6, %s1940_s30  ;;  %1404 = vrot.lane.b32.xlu0 %v1400_v56, %s1940_s30  ;;  %v1259_v56 = vld [vmem:[#allocation2 + $0xd] sm:$0x7] }
 0x246   :  { %1426 = vrot.lane.b32.xlu1 %v1421_v27, %s1940_s30  ;;  %1424 = vrot.lane.b32.xlu0 %v1420_v13, %s1940_s30  ;;  %v1261_v27 = vmul.f32 %v1259_v56, %v2807_v49  ;;  %v1260_v13 = vmul.f32 %v1258_v41, %v2807_v49  ;;  %v878_v56 = vmul.f32 %v876_v39, %v2810_v36 }
 0x248   :  { %v1265_v33 = vmul.f32 %v1263_v34, %v1261_v27  ;;  %v1264_v63 = vmul.f32 %v1263_v34, %v1260_v13  ;;  %v1283_v22 = vmul.f32 %v1281_v35, %v1261_v27 }
 0x24a   :  { %1444 = vrot.lane.b32.xlu1 %v1439_v45, %s1940_s30  ;;  %1442 = vrot.lane.b32.xlu0 %v1438_v12, %s1940_s30  ;;  %s1753_s30 = sld [smem:[#allocation9 + $0xd]]  ;;  %v1299_v45 = vld [vmem:[#allocation2 + $0x5] sm:$0x7]  ;;  %v1298_v12 = vld [vmem:[#allocation2 + $0x1] sm:$0x7] }
 0x24e   :  { %994 = vrot.lane.b32.xlu1 %v989_v23, %s1943_s20  ;;  %992 = vrot.lane.b32.xlu0 %v988_v7, %s1943_s20  ;;  %v1282_v23 = vmul.f32 %v1281_v35, %v1260_v13  ;;  %v2808_v7 = vld [vmem:[#allocation28_spill] sm:$0xff] }
 0x24f   :  { %v1301_v15 = vmul.f32 %v1299_v45, %v2808_v7  ;;  %v1300_v1 = vmul.f32 %v1298_v12, %v2808_v7  ;;  %v1341_v9 = vmul.f32 %v1339_v43, %v2808_v7  ;;  %v1340_v14 = vmul.f32 %v1338_v44, %v2808_v7 }
 0x250   :  { %v1085_v55 = vstv %s1753_s30  ;;  %v1515_v45 = vstv %s2568_s18 }
 0x251   :  { %v1087_v38 = vmul.f32 %v1085_v55, %v1065_v21  ;;  %v1086_v25 = vmul.f32 %v1085_v55, %v1064_v29  ;;  %v2809_v21 = vld [vmem:[#allocation31_spill] sm:$0xff]  ;;  %v1457_v55 = vstv %s1772_s19 }
 0x252   :  { %1012 = vrot.lane.b32.xlu1 %v1007_v8, %s1943_s20  ;;  %1010 = vrot.lane.b32.xlu0 %v1006_v18, %s1943_s20  ;;  %v1305_v8 = vmul.f32 %v1303_v17, %v1301_v15  ;;  %v1304_v18 = vmul.f32 %v1303_v17, %v1300_v1  ;;  %v1455_v29 = vmul.f32 %v2485_v19, %v2809_v21 }
 0x253   :  { %v1454_v40 = vmul.f32 %v2487_v48, %v2809_v21  ;;  %v1494_v4 = vmul.f32 %v1492_v30, %v2809_v21 }
 0x254   :  { %v1459_v37 = vmul.f32 %v1457_v55, %v1455_v29 }
 0x255   :  { %v1458_v19 = vmul.f32 %v1457_v55, %v1454_v40 }
 0x256   :  { %1034 = vrot.lane.b32.xlu1 %v1029_v2, %s1943_s20  ;;  %1032 = vrot.lane.b32.xlu0 %v1028_v5, %s1943_s20 }
 0x25a   :  { %1052 = vrot.lane.b32.xlu1 %v1047_v0, %s1943_s20  ;;  %1050 = vrot.lane.b32.xlu0 %v1046_v24, %s1943_s20  ;;  %s1761_s20 = sld [smem:[#allocation9 + $0x15]]  ;;  %v1345_v0 = vmul.f32 %v1343_v11, %v1341_v9  ;;  %v1344_v24 = vmul.f32 %v1343_v11, %v1340_v14 }
 0x25e   :  { %1074 = vrot.lane.b32.xlu1 %v1069_v54, %s1941_s10  ;;  %1072 = vrot.lane.b32.xlu0 %v1068_v47, %s1941_s10  ;;  %v1363_v54 = vmul.f32 %v1361_v28, %v1341_v9  ;;  %v1362_v47 = vmul.f32 %v1361_v28, %v1340_v14 }
 0x260   :  { %v1241_v6 = vstv %s1761_s20 }
 0x261   :  { %v1243_v59 = vmul.f32 %v1241_v6, %v1221_v26  ;;  %v1242_v32 = vmul.f32 %v1241_v6, %v1220_v20  ;;  %v1495_v20 = vmul.f32 %v1493_v42, %v2809_v21 }
 0x262   :  { %1092 = vrot.lane.b32.xlu1 %v1087_v38, %s1941_s10  ;;  %1090 = vrot.lane.b32.xlu0 %v1086_v25, %s1941_s10  ;;  %v877_v38 = vld [vmem:[#allocation2 + $0x4] sm:$0x7]  ;;  %v892_v25 = vld [vmem:[#allocation2 + $0x8] sm:$0x7] }
 0x263   :  { %v894_v52 = vmul.f32 %v892_v25, %v2810_v36 }
 0x265   :  { %v898_v13 = vmul.f32 %v897_v46, %v894_v52 }
 0x266   :  { %1114 = vrot.lane.b32.xlu1 %v1109_v31, %s1941_s10  ;;  %1112 = vrot.lane.b32.xlu0 %v1108_v50, %s1941_s10  ;;  %v895_v31 = vmul.f32 %v893_v60, %v2810_v36  ;;  %v879_v50 = vmul.f32 %v877_v38, %v2810_v36 }
 0x268   :  { %v899_v6 = vmul.f32 %v897_v46, %v895_v31 }
 0x26a   :  { %1132 = vrot.lane.b32.xlu1 %v1127_v16, %s1941_s10  ;;  %1130 = vrot.lane.b32.xlu0 %v1126_v58, %s1941_s10  ;;  %s1765_s10 = sld [smem:[#allocation9 + $0x19]] }
 0x26e   :  { %1230 = vrot.lane.b32.xlu1 %v1225_v10, %s1944_s0  ;;  %1228 = vrot.lane.b32.xlu0 %v1224_v53, %s1944_s0  ;;  %v881_v10 = vstv %s2559_s24  ;;  %v1497_v53 = vstv %s2561_s25 }
 0x26f   :  { %v883_v27 = vmul.f32 %v881_v10, %v879_v50  ;;  %v1498_v35 = vmul.f32 %v1497_v53, %v1494_v4 }
 0x270   :  { %v1321_v61 = vstv %s1765_s10 }
 0x271   :  { %v1323_v2 = vmul.f32 %v1321_v61, %v1301_v15  ;;  %v1322_v5 = vmul.f32 %v1321_v61, %v1300_v1  ;;  %v901_v12 = vadd.f32 %v899_v6, %v883_v27 }
 0x272   :  { %1248 = vrot.lane.b32.xlu1 %v1243_v59, %s1944_s0  ;;  %1246 = vrot.lane.b32.xlu0 %v1242_v32, %s1944_s0  ;;  %v903_v32 = vstv %s2565_s26 }
 0x273   :  { %v905_v7 = vmul.f32 %v903_v32, %v895_v31  ;;  %v904_v61 = vmul.f32 %v903_v32, %v894_v52 }
 0x276   :  { %1270 = vrot.lane.b32.xlu1 %v1265_v33, %s1944_s0  ;;  %1268 = vrot.lane.b32.xlu0 %v1264_v63, %s1944_s0  ;;  %v1499_v63 = vmul.f32 %v1497_v53, %v1495_v20 }
 0x27a   :  { %1288 = vrot.lane.b32.xlu1 %v1283_v22, %s1944_s0  ;;  %1286 = vrot.lane.b32.xlu0 %v1282_v23, %s1944_s0  ;;  %s2549_s0 = sld [smem:[#allocation9 + $0x21]]  ;;  %v882_v22 = vmul.f32 %v881_v10, %v878_v56 }
 0x27e   :  { %1310 = vrot.lane.b32.xlu1 %v1305_v8, %s1942_s5  ;;  %1308 = vrot.lane.b32.xlu0 %v1304_v18, %s1942_s5  ;;  %v900_v18 = vadd.f32 %v898_v13, %v882_v22 }
 0x280   :  { %v1475_v48 = vstv %s2549_s0 }
 0x281   :  { %v1477_v49 = vmul.f32 %v1475_v48, %v1455_v29  ;;  %v1476_v26 = vmul.f32 %v1475_v48, %v1454_v40 }
 0x282   :  { %1328 = vrot.lane.b32.xlu1 %v1323_v2, %s1942_s5  ;;  %1326 = vrot.lane.b32.xlu0 %v1322_v5, %s1942_s5  ;;  %v1517_v2 = vmul.f32 %v1515_v45, %v1495_v20  ;;  %v1516_v5 = vmul.f32 %v1515_v45, %v1494_v4 }
 0x286   :  { %1350 = vrot.lane.b32.xlu1 %v1345_v0, %s1942_s5  ;;  %1348 = vrot.lane.b32.xlu0 %v1344_v24, %s1942_s5 }
 0x28a   :  { %1368 = vrot.lane.b32.xlu1 %v1363_v54, %s1942_s5  ;;  %1366 = vrot.lane.b32.xlu0 %v1362_v47, %s1942_s5  ;;  %s2573_s5 = sld [smem:[#allocation9 + $0x1]] }
 0x28e   :  { %1464 = vrot.lane.b32.xlu1 %v1459_v37, %s1945_s7  ;;  %1462 = vrot.lane.b32.xlu0 %v1458_v19, %s1945_s7 }
 0x290   :  { %v919_v16 = vpop.permute.xlu1 %918  ;;  %v917_v58 = vpop.permute.xlu0 %916  ;;  %v887_v23 = vstv %s2573_s5 }
 0x291   :  { %v921_v41 = vrot.slane %v919_v16, 1  ;;  %v920_v59 = vrot.slane %v917_v58, 1  ;;  %v889_v9 = vmul.f32 %v887_v23, %v879_v50  ;;  %v888_v28 = vmul.f32 %v887_v23, %v878_v56 }
 0x292   :  { %1482 = vrot.lane.b32.xlu1 %v1477_v49, %s1945_s7  ;;  %1480 = vrot.lane.b32.xlu0 %v1476_v26, %s1945_s7 }
 0x293   :  { %v923_v15 = vsel %vm189_vm2, %v919_v16, %v921_v41  ;;  %v922_v1 = vsel %vm189_vm2, %v917_v58, %v920_v59  ;;  %v907_v47 = vadd.f32 %v905_v7, %v889_v9  ;;  %v906_v55 = vadd.f32 %v904_v61, %v888_v28 }
 0x294   :  { %v937_v34 = vpop.permute.xlu1 %936  ;;  %v935_v33 = vpop.permute.xlu0 %934  ;;  %v927_v0 = vadd.f32 %v923_v15, %v901_v12  ;;  %v926_v24 = vadd.f32 %v922_v1, %v900_v18 }
 0x295   :  { %v939_v17 = vrot.slane %v937_v34, 1  ;;  %v938_v8 = vrot.slane %v935_v33, 1 }
 0x296   :  { %1504 = vrot.lane.b32.xlu1 %v1499_v63, %s1945_s7  ;;  %1502 = vrot.lane.b32.xlu0 %v1498_v35, %s1945_s7 }
 0x297   :  { %v941_v21 = vsel %vm189_vm2, %v937_v34, %v939_v17  ;;  %v940_v29 = vsel %vm189_vm2, %v935_v33, %v938_v8 }
 0x298   :  { %v957_v43 = vpop.permute.xlu1 %956  ;;  %v955_v44 = vpop.permute.xlu0 %954  ;;  %v945_v42 = vadd.f32 %v941_v21, %v907_v47  ;;  %v944_v30 = vadd.f32 %v940_v29, %v906_v55 }
 0x299   :  { %v959_v14 = vrot.slane %v957_v43, 1  ;;  %v958_v11 = vrot.slane %v955_v44, 1 }
 0x29a   :  { %1522 = vrot.lane.b32.xlu1 %v1517_v2, %s1945_s7  ;;  %1520 = vrot.lane.b32.xlu0 %v1516_v5, %s1945_s7  ;;  %s2706_s7 = sld [smem:[#allocation10]] }
 0x29b   :  { %v961_v40 = vsel %vm189_vm2, %v957_v43, %v959_v14  ;;  %v960_v54 = vsel %vm189_vm2, %v955_v44, %v958_v11 }
 0x29c   :  { %v965_v60 = vadd.f32 %v961_v40, %v927_v0  ;;  %v964_v37 = vadd.f32 %v960_v54, %v926_v24  ;;  %v975_v19 = vpop.permute.xlu1 %974  ;;  %v973_v38 = vpop.permute.xlu0 %972 }
 0x29d   :  { %v977_v25 = vrot.slane %v975_v19, 1  ;;  %v976_v48 = vrot.slane %v973_v38, 1 }
 0x29f   :  { %v979_v36 = vsel %vm189_vm2, %v975_v19, %v977_v25  ;;  %v978_v31 = vsel %vm189_vm2, %v973_v38, %v976_v48 }
 0x2a0   :  { %v2600_v50 = vadd.f32 %v979_v36, %v945_v42  ;;  %v2602_v46 = vadd.f32 %v978_v31, %v944_v30  ;;  %v1153_v39 = vpop.permute.xlu1 %1152  ;;  %v1151_v52 = vpop.permute.xlu0 %1150 }
 0x2a1   :  { %v1155_v15 = vrot.slane %v1153_v39, 7  ;;  %v1154_v1 = vrot.slane %v1151_v52, 7 }
 0x2a3   :  { %v1157_v11 = vsel %vm142_vm7, %v1155_v15, %v1153_v39  ;;  %v1156_v0 = vsel %vm142_vm7, %v1154_v1, %v1151_v52 }
 0x2a4   :  { %v2604_v16 = vpop.permute.xlu1 %1170  ;;  %v2606_v58 = vpop.permute.xlu0 %1168 }
 0x2a5   :  { %v1173_v24 = vrot.slane %v2604_v16, 7  ;;  %v1172_v28 = vrot.slane %v2606_v58, 7 }
 0x2a8   :  { %v2608_v49 = vpop.permute.xlu1 %1190  ;;  %v2610_v26 = vpop.permute.xlu0 %1188 }
 0x2a9   :  { %v1193_v39 = vrot.slane %v2608_v49, 7  ;;  %v1192_v52 = vrot.slane %v2610_v26, 7 }
 0x2ac   :  { %v2612_v20 = vpop.permute.xlu1 %1208  ;;  %v2614_v4 = vpop.permute.xlu0 %1206 }
 0x2b0   :  { %v2616_v10 = vpop.permute.xlu1 %1388  ;;  %v2618_v53 = vpop.permute.xlu0 %1386 }
 0x2b4   :  { %v2620_v6 = vpop.permute.xlu1 %1406  ;;  %v2622_v56 = vpop.permute.xlu0 %1404 }
 0x2b8   :  { %v2624_v41 = vpop.permute.xlu1 %1426  ;;  %v2626_v59 = vpop.permute.xlu0 %1424 }
 0x2bc   :  { %v2628_v32 = vpop.permute.xlu1 %1444  ;;  %v2630_v27 = vpop.permute.xlu0 %1442 }
 0x2c0   :  { %v995_v13 = vpop.permute.xlu1 %994  ;;  %v993_v34 = vpop.permute.xlu0 %992 }
 0x2c1   :  { %v997_v23 = vrot.slane %v995_v13, 1  ;;  %v996_v7 = vrot.slane %v993_v34, 1 }
 0x2c3   :  { %v999_v2 = vsel %vm273_vm9, %v995_v13, %v997_v23  ;;  %v998_v5 = vsel %vm273_vm9, %v993_v34, %v996_v7 }
 0x2c4   :  { %v1013_v33 = vpop.permute.xlu1 %1012  ;;  %v1011_v63 = vpop.permute.xlu0 %1010  ;;  %v1003_v19 = vadd.f32 %v999_v2, %v965_v60  ;;  %v1002_v38 = vadd.f32 %v998_v5, %v964_v37 }
 0x2c5   :  { %v1015_v43 = vrot.slane %v1013_v33, 1  ;;  %v1014_v44 = vrot.slane %v1011_v63, 1 }
 0x2c7   :  { %v1017_v25 = vsel %vm273_vm9, %v1013_v33, %v1015_v43  ;;  %v1016_v48 = vsel %vm273_vm9, %v1011_v63, %v1014_v44 }
 0x2c8   :  { %v1035_v35 = vpop.permute.xlu1 %1034  ;;  %v1033_v45 = vpop.permute.xlu0 %1032  ;;  %v1021_v23 = vadd.f32 %v1017_v25, %v2600_v50  ;;  %v1020_v7 = vadd.f32 %v1016_v48, %v2602_v46  ;;  %v1195_v50 = vsel %vm142_vm7, %v1193_v39, %v2608_v49  ;;  %v1194_v46 = vsel %vm142_vm7, %v1192_v52, %v2610_v26 }
 0x2c9   :  { %v1037_v18 = vrot.slane %v1035_v35, 1  ;;  %v1036_v61 = vrot.slane %v1033_v45, 1 }
 0x2cb   :  { %v1039_v40 = vsel %vm273_vm9, %v1035_v35, %v1037_v18  ;;  %v1038_v54 = vsel %vm273_vm9, %v1033_v45, %v1036_v61 }
 0x2cc   :  { %v1053_v12 = vpop.permute.xlu1 %1052  ;;  %v1051_v22 = vpop.permute.xlu0 %1050  ;;  %v1043_v13 = vadd.f32 %v1039_v40, %v1003_v19  ;;  %v1042_v34 = vadd.f32 %v1038_v54, %v1002_v38 }
 0x2cd   :  { %v1055_v47 = vrot.slane %v1053_v12, 1  ;;  %v1054_v55 = vrot.slane %v1051_v22, 1 }
 0x2cf   :  { %v1057_v60 = vsel %vm273_vm9, %v1053_v12, %v1055_v47  ;;  %v1056_v37 = vsel %vm273_vm9, %v1051_v22, %v1054_v55  ;;  %v1211_v47 = vrot.slane %v2612_v20, 7  ;;  %v1210_v55 = vrot.slane %v2614_v4, 7 }
 0x2d0   :  { %v1075_v17 = vpop.permute.xlu1 %1074  ;;  %v1073_v8 = vpop.permute.xlu0 %1072  ;;  %v1061_v43 = vadd.f32 %v1057_v60, %v1021_v23  ;;  %v1060_v12 = vadd.f32 %v1056_v37, %v1020_v7 }
 0x2d1   :  { %v1077_v9 = vrot.slane %v1075_v17, 1  ;;  %v1076_v14 = vrot.slane %v1073_v8, 1  ;;  %v1213_v39 = vsel %vm142_vm7, %v1211_v47, %v2612_v20  ;;  %v1212_v52 = vsel %vm142_vm7, %v1210_v55, %v2614_v4 }
 0x2d3   :  { %v1079_v42 = vsel %vm359_vm8, %v1075_v17, %v1077_v9  ;;  %v1078_v30 = vsel %vm359_vm8, %v1073_v8, %v1076_v14 }
 0x2d4   :  { %v1093_v21 = vpop.permute.xlu1 %1092  ;;  %v1091_v29 = vpop.permute.xlu0 %1090  ;;  %v1083_v15 = vadd.f32 %v1079_v42, %v1043_v13  ;;  %v1082_v1 = vadd.f32 %v1078_v30, %v1042_v34 }
 0x2d5   :  { %v1095_v36 = vrot.slane %v1093_v21, 1  ;;  %v1094_v31 = vrot.slane %v1091_v29, 1 }
 0x2d7   :  { %v1097_v17 = vsel %vm359_vm8, %v1093_v21, %v1095_v36  ;;  %v1096_v8 = vsel %vm359_vm8, %v1091_v29, %v1094_v31  ;;  %v1175_v36 = vsel %vm142_vm7, %v1173_v24, %v2604_v16 }
 0x2d8   :  { %v1115_v35 = vpop.permute.xlu1 %1114  ;;  %v1113_v45 = vpop.permute.xlu0 %1112  ;;  %v1101_v21 = vadd.f32 %v1097_v17, %v1061_v43  ;;  %v1100_v29 = vadd.f32 %v1096_v8, %v1060_v12 }
 0x2d9   :  { %v1117_v33 = vrot.slane %v1115_v35, 1  ;;  %v1116_v63 = vrot.slane %v1113_v45, 1 }
 0x2db   :  { %v1119_v18 = vsel %vm359_vm8, %v1115_v35, %v1117_v33  ;;  %v1118_v61 = vsel %vm359_vm8, %v1113_v45, %v1116_v63 }
 0x2dc   :  { %v1123_v44 = vadd.f32 %v1119_v18, %v1083_v15  ;;  %v1122_v22 = vadd.f32 %v1118_v61, %v1082_v1  ;;  %v1133_v2 = vpop.permute.xlu1 %1132  ;;  %v1131_v5 = vpop.permute.xlu0 %1130 }
 0x2dd   :  { %v1135_v9 = vrot.slane %v1133_v2, 1  ;;  %v1134_v14 = vrot.slane %v1131_v5, 1 }
 0x2de   :  { %v1161_v40 = vadd.f32 %v1157_v11, %v1123_v44  ;;  %v1160_v54 = vadd.f32 %v1156_v0, %v1122_v22  ;;  %v1174_v11 = vsel %vm142_vm7, %v1172_v28, %v2606_v58  ;;  %v1391_v58 = vrot.slane %v2616_v10, 7 }
 0x2df   :  { %v1137_v19 = vsel %vm359_vm8, %v1133_v2, %v1135_v9  ;;  %v1136_v38 = vsel %vm359_vm8, %v1131_v5, %v1134_v14  ;;  %v1390_v28 = vrot.slane %v2618_v53, 7  ;;  %v1409_v44 = vrot.slane %v2620_v6, 7 }
 0x2e0   :  { %v1141_v25 = vadd.f32 %v1137_v19, %v1101_v21  ;;  %v1140_v48 = vadd.f32 %v1136_v38, %v1100_v29  ;;  %v1199_v49 = vadd.f32 %v1195_v50, %v1161_v40  ;;  %v1231_v42 = vpop.permute.xlu1 %1230  ;;  %v1198_v30 = vadd.f32 %v1194_v46, %v1160_v54  ;;  %v1229_v26 = vpop.permute.xlu0 %1228 }
 0x2e1   :  { %v1233_v16 = vrot.slane %v1231_v42, 7  ;;  %v1232_v24 = vrot.slane %v1229_v26, 7  ;;  %v1393_v43 = vsel %vm688_vm10, %v1391_v58, %v2616_v10  ;;  %v1392_v12 = vsel %vm688_vm10, %v1390_v28, %v2618_v53 }
 0x2e2   :  { %v1179_v0 = vadd.f32 %v1175_v36, %v1141_v25  ;;  %v1178_v31 = vadd.f32 %v1174_v11, %v1140_v48  ;;  %v1408_v22 = vrot.slane %v2622_v56, 7  ;;  %v1429_v19 = vrot.slane %v2624_v41, 7 }
 0x2e3   :  { %v1235_v17 = vsel %vm522_vm12, %v1233_v16, %v1231_v42  ;;  %v1234_v8 = vsel %vm522_vm12, %v1232_v24, %v1229_v26  ;;  %v1428_v38 = vrot.slane %v2626_v59, 7 }
 0x2e4   :  { %v1217_v13 = vadd.f32 %v1213_v39, %v1179_v0  ;;  %v1249_v34 = vpop.permute.xlu1 %1248  ;;  %v1216_v35 = vadd.f32 %v1212_v52, %v1178_v31  ;;  %v1247_v45 = vpop.permute.xlu0 %1246  ;;  %v1239_v21 = vadd.f32 %v1235_v17, %v1199_v49  ;;  %v1238_v29 = vadd.f32 %v1234_v8, %v1198_v30 }
 0x2e5   :  { %v1251_v1 = vrot.slane %v1249_v34, 7  ;;  %v1250_v4 = vrot.slane %v1247_v45, 7  ;;  %v1447_v17 = vrot.slane %v2628_v32, 7  ;;  %v1446_v8 = vrot.slane %v2630_v27, 7 }
 0x2e7   :  { %v1253_v40 = vsel %vm522_vm12, %v1251_v1, %v1249_v34  ;;  %v1252_v10 = vsel %vm522_vm12, %v1250_v4, %v1247_v45 }
 0x2e8   :  { %v1271_v60 = vpop.permute.xlu1 %1270  ;;  %v1269_v37 = vpop.permute.xlu0 %1268  ;;  %v1257_v0 = vadd.f32 %v1253_v40, %v1217_v13  ;;  %v1256_v31 = vadd.f32 %v1252_v10, %v1216_v35  ;;  %v1431_v13 = vsel %vm688_vm10, %v1429_v19, %v2624_v41  ;;  %v1430_v35 = vsel %vm688_vm10, %v1428_v38, %v2626_v59 }
 0x2e9   :  { %v1273_v20 = vrot.slane %v1271_v60, 7  ;;  %v1272_v15 = vrot.slane %v1269_v37, 7 }
 0x2eb   :  { %v1275_v50 = vsel %vm522_vm12, %v1273_v20, %v1271_v60  ;;  %v1274_v46 = vsel %vm522_vm12, %v1272_v15, %v1269_v37 }
 0x2ec   :  { %v1289_v33 = vpop.permute.xlu1 %1288  ;;  %v1287_v63 = vpop.permute.xlu0 %1286  ;;  %v1279_v25 = vadd.f32 %v1275_v50, %v1239_v21  ;;  %v1278_v48 = vadd.f32 %v1274_v46, %v1238_v29  ;;  %v1449_v21 = vsel %vm688_vm10, %v1447_v17, %v2628_v32  ;;  %v1448_v29 = vsel %vm688_vm10, %v1446_v8, %v2630_v27 }
 0x2ed   :  { %v1291_v9 = vrot.slane %v1289_v33, 7  ;;  %v1290_v14 = vrot.slane %v1287_v63, 7 }
 0x2ef   :  { %v1293_v49 = vsel %vm522_vm12, %v1291_v9, %v1289_v33  ;;  %v1292_v30 = vsel %vm522_vm12, %v1290_v14, %v1287_v63  ;;  %v1411_v9 = vsel %vm688_vm10, %v1409_v44, %v2620_v6 }
 0x2f0   :  { %v1311_v23 = vpop.permute.xlu1 %1310  ;;  %v1309_v7 = vpop.permute.xlu0 %1308  ;;  %v1297_v16 = vadd.f32 %v1293_v49, %v1257_v0  ;;  %v1296_v24 = vadd.f32 %v1292_v30, %v1256_v31 }
 0x2f1   :  { %v1313_v18 = vrot.slane %v1311_v23, 7  ;;  %v1312_v61 = vrot.slane %v1309_v7, 7 }
 0x2f3   :  { %v1315_v53 = vsel %vm609_vm11, %v1313_v18, %v1311_v23  ;;  %v1314_v54 = vsel %vm609_vm11, %v1312_v61, %v1309_v7 }
 0x2f4   :  { %v1329_v2 = vpop.permute.xlu1 %1328  ;;  %v1327_v5 = vpop.permute.xlu0 %1326  ;;  %v1319_v39 = vadd.f32 %v1315_v53, %v1279_v25  ;;  %v1318_v52 = vadd.f32 %v1314_v54, %v1278_v48 }
 0x2f5   :  { %v1331_v47 = vrot.slane %v1329_v2, 7  ;;  %v1330_v55 = vrot.slane %v1327_v5, 7 }
 0x2f7   :  { %v1333_v34 = vsel %vm609_vm11, %v1331_v47, %v1329_v2  ;;  %v1332_v45 = vsel %vm609_vm11, %v1330_v55, %v1327_v5 }
 0x2f8   :  { %v1351_v42 = vpop.permute.xlu1 %1350  ;;  %v1349_v26 = vpop.permute.xlu0 %1348  ;;  %v1337_v20 = vadd.f32 %v1333_v34, %v1297_v16  ;;  %v1336_v15 = vadd.f32 %v1332_v45, %v1296_v24  ;;  %v1537_v24 = vstv %s1776_s2 }
 0x2f9   :  { %v1353_v36 = vrot.slane %v1351_v42, 7  ;;  %v1352_v11 = vrot.slane %v1349_v26, 7 }
 0x2fb   :  { %v1355_v60 = vsel %vm609_vm11, %v1353_v36, %v1351_v42  ;;  %v1354_v37 = vsel %vm609_vm11, %v1352_v11, %v1349_v26  ;;  %v1533_v42 = vstv %s2706_s7 }
 0x2fc   :  { %v1359_v58 = vadd.f32 %v1355_v60, %v1319_v39  ;;  %v1358_v33 = vadd.f32 %v1354_v37, %v1318_v52  ;;  %v1369_v28 = vpop.permute.xlu1 %1368  ;;  %v1367_v63 = vpop.permute.xlu0 %1366 }
 0x2fd   :  { %v1371_v23 = vrot.slane %v1369_v28, 7  ;;  %v1370_v7 = vrot.slane %v1367_v63, 7 }
 0x2fe   :  { %v1397_v1 = vadd.f32 %v1393_v43, %v1359_v58  ;;  %v1396_v4 = vadd.f32 %v1392_v12, %v1358_v33  ;;  %v1410_v43 = vsel %vm688_vm10, %v1408_v22, %v2622_v56 }
 0x2ff   :  { %v1373_v18 = vsel %vm609_vm11, %v1371_v23, %v1369_v28  ;;  %v1372_v61 = vsel %vm609_vm11, %v1370_v7, %v1367_v63  ;;  %v2811_v23 = vlaneseq }
 0x300   :  { %v1377_v2 = vadd.f32 %v1373_v18, %v1337_v20  ;;  %v1376_v5 = vadd.f32 %v1372_v61, %v1336_v15  ;;  %v1435_v41 = vadd.f32 %v1431_v13, %v1397_v1  ;;  %v1465_v50 = vpop.permute.xlu1 %1464  ;;  %v1434_v46 = vadd.f32 %v1430_v35, %v1396_v4  ;;  %v1463_v59 = vpop.permute.xlu0 %1462 }
 0x301   :  { %v1467_v40 = vrot.slane %v1465_v50, 7  ;;  %v1466_v10 = vrot.slane %v1463_v59, 7  ;;  %v1569_v7 = vshrl.u32 %v2811_v23, 7 }
 0x302   :  { %v1415_v12 = vadd.f32 %v1411_v9, %v1377_v2  ;;  %v1414_v14 = vadd.f32 %v1410_v43, %v1376_v5 }
 0x303   :  { %v1469_v44 = vsel %vm771_vm13, %v1467_v40, %v1465_v50  ;;  %v1468_v56 = vsel %vm771_vm13, %v1466_v10, %v1463_v59  ;;  %v1574_v17 = vsub.s32 0, %v1569_v7  ;;  %v1578_v8 = vsub.s32 1, %v1569_v7 }
 0x304   :  { %v1453_v53 = vadd.f32 %v1449_v21, %v1415_v12  ;;  %v1483_v54 = vpop.permute.xlu1 %1482  ;;  %v1452_v47 = vadd.f32 %v1448_v29, %v1414_v14  ;;  %v1481_v6 = vpop.permute.xlu0 %1480  ;;  %v1473_v48 = vadd.f32 %v1469_v44, %v1435_v41  ;;  %v1472_v27 = vadd.f32 %v1468_v56, %v1434_v46  ;;  %v2812_v41 = vld [vmem:[#allocation22_spill] sm:$0xff]  ;;  %v2813_v46 = vld [vmem:[#allocation24_spill] sm:$0xff] }
 0x305   :  { %v1485_v22 = vrot.slane %v1483_v54, 7  ;;  %v1484_v55 = vrot.slane %v1481_v6, 7  ;;  %v1633_v12 = vrot.slane %v2441_v51, %v1574_v17  ;;  %v1637_v14 = vrot.slane %v2441_v51, %v1578_v8 }
 0x306   :  { %v1625_v21 = vrot.slane %v2443_v57, %v1574_v17  ;;  %v1629_v29 = vrot.slane %v2443_v57, %v1578_v8  ;;  %v1660_v40 = vrot.slane %v2453_v3, %v1574_v17  ;;  %vm1592_vm14 = vcmp.eq.s32.totalorder %v1569_v7, 1 }
 0x307   :  { %v1487_v26 = vsel %vm771_vm13, %v1485_v22, %v1483_v54  ;;  %v1486_v49 = vsel %vm771_vm13, %v1484_v55, %v1481_v6  ;;  %v2814_v54 = vld [vmem:[#allocation25_spill] sm:$0xff]  ;;  %v2815_v6 = vld [vmem:[#allocation26_spill] sm:$0xff]  ;;  %vm1619_vm15 = vcmp.eq.s32.totalorder %v1569_v7, 2  ;;  %vm1646_vm0 = vcmp.eq.s32.totalorder %v1569_v7, 3 }
 0x308   :  { %v1505_v19 = vpop.permute.xlu1 %1504  ;;  %v1503_v38 = vpop.permute.xlu0 %1502  ;;  %v1491_v45 = vadd.f32 %v1487_v26, %v1453_v53  ;;  %v1490_v60 = vadd.f32 %v1486_v49, %v1452_v47 }
 0x309   :  { %v1507_v32 = vrot.slane %v1505_v19, 7  ;;  %v1506_v25 = vrot.slane %v1503_v38, 7 }
 0x30b   :  { %v1509_v30 = vsel %vm771_vm13, %v1507_v32, %v1505_v19  ;;  %v1508_v36 = vsel %vm771_vm13, %v1506_v25, %v1503_v38  ;;  %v1664_v25 = vrot.slane %v2453_v3, %v1578_v8 }
 0x30c   :  { %v1513_v11 = vadd.f32 %v1509_v30, %v1473_v48  ;;  %v1512_v0 = vadd.f32 %v1508_v36, %v1472_v27  ;;  %v1523_v31 = vpop.permute.xlu1 %1522  ;;  %v1521_v39 = vpop.permute.xlu0 %1520  ;;  %v1652_v48 = vrot.slane %v2455_v62, %v1574_v17  ;;  %v1656_v27 = vrot.slane %v2455_v62, %v1578_v8 }
 0x30d   :  { %v1525_v52 = vrot.slane %v1523_v31, 7  ;;  %v1524_v34 = vrot.slane %v1521_v39, 7 }
 0x30e   :  { %v1535_v37 = vadd.f32 %v1533_v42, %v1513_v11  ;;  %v1534_v16 = vadd.f32 %v1533_v42, %v1512_v0 }
 0x30f   :  { %v1527_v58 = vsel %vm771_vm13, %v1525_v52, %v1523_v31  ;;  %v1526_v33 = vsel %vm771_vm13, %v1524_v34, %v1521_v39 }
 0x310   :  { %v1531_v28 = vadd.f32 %v1527_v58, %v1491_v45  ;;  %v1530_v63 = vadd.f32 %v1526_v33, %v1490_v60  ;;  %1544 = vrot.lane.b32.xlu1 %v1535_v37, %s1939_s22  ;;  %1542 = vrot.lane.b32.xlu0 %v1534_v16, %s1939_s22 }
 0x312   :  { %v1539_v13 = vadd.f32 %v1537_v24, %v1531_v28  ;;  %v1538_v35 = vadd.f32 %v1537_v24, %v1530_v63 }
 0x314   :  { %1558 = vrot.lane.b32.xlu1 %v1539_v13, %s1939_s22  ;;  %1556 = vrot.lane.b32.xlu0 %v1538_v35, %s1939_s22  ;;  %s1946_s22 = smov [#allocation15]  }
 0x315   :  { %s1688_s27 = sshll.u32 %s1946_s22, 4  ;;  %s1689_s27 = int_to_ptr.vmem [resolvable:$true] %s1688_s27 }
 0x316   :  { %s1891_s28 = scalar_lea.vmem %s1689_s27, 256  ;;  %p1896_p9 = scmp.lt.s32.totalorder %s1689_s27, %s1689_s27 }
 0x317   :  { %p1892_p8 = scmp.ne.s32.totalorder %s1689_s27, %s1891_s28  ;;  %p1897_p10 = scmp.lt.s32.totalorder %s1891_s28, %s1891_s28 }
 0x319   :  { %p1898_p11 = por %p1897_p10, %p1896_p9 }
 0x31b   :  { %p1899_p12 = pnand %p1898_p11, %p1892_p8 }
 0x382   :  { %v1545_v20 = vpop.permute.xlu1 %1544  ;;  %v1543_v15 = vpop.permute.xlu0 %1542 }
 0x383   :  { %v1547_v1 = vrot.slane %v1545_v20, 1  ;;  %v1546_v4 = vrot.slane %v1543_v15, 1 }
 0x385   :  { %v1549_v18 = vsel %vm754_vm6, %v1545_v20, %v1547_v1  ;;  %v1548_v61 = vsel %vm754_vm6, %v1543_v15, %v1546_v4 }
 0x386   :  { %v1559_v2 = vpop.permute.xlu1 %1558  ;;  %v1557_v5 = vpop.permute.xlu0 %1556  ;;  %v1553_v50 = vsub.f32 %v2812_v41, %v1549_v18  ;;  %v1552_v59 = vsub.f32 %v2813_v46, %v1548_v61 }
 0x387   :  { %v1561_v9 = vrot.slane %v1559_v2, 1  ;;  %v1560_v43 = vrot.slane %v1557_v5, 1 }
 0x388   :  { %v1583_v56 = vrot.slane %v1553_v50, %v1574_v17  ;;  %v1587_v22 = vrot.slane %v1553_v50, %v1578_v8  ;;  %v1575_v55 = vrot.slane %v1552_v59, %v1574_v17  ;;  %v1579_v51 = vrot.slane %v1552_v59, %v1578_v8 }
 0x389   :  { %v1563_v10 = vsel %vm754_vm6, %v1559_v2, %v1561_v9  ;;  %v1562_v53 = vsel %vm754_vm6, %v1557_v5, %v1560_v43 }
 0x38a   :  { %v1567_v47 = vsub.f32 %v2814_v54, %v1563_v10  ;;  %v1566_v44 = vsub.f32 %v2815_v6, %v1562_v53 }
 0x38c   :  { %v1606_v19 = vrot.slane %v1567_v47, %v1574_v17  ;;  %v1610_v38 = vrot.slane %v1567_v47, %v1578_v8  ;;  %v1598_v32 = vrot.slane %v1566_v44, %v1574_v17  ;;  %v1602_v57 = vrot.slane %v1566_v44, %v1578_v8 }
 0x38e   :  { %v1615_v42 = vsel %vm1592_vm14, %v1598_v32, %v1575_v55  ;;  %v1616_v26 = vsel %vm1592_vm14, %v1602_v57, %v1579_v51  ;;  %v1617_v49 = vsel %vm1592_vm14, %v1606_v19, %v1583_v56  ;;  %v1618_v30 = vsel %vm1592_vm14, %v1610_v38, %v1587_v22 }
 0x38f   :  { %v1642_v36 = vsel %vm1619_vm15, %v1625_v21, %v1615_v42  ;;  %v1643_v11 = vsel %vm1619_vm15, %v1629_v29, %v1616_v26  ;;  %v1644_v3 = vsel %vm1619_vm15, %v1633_v12, %v1617_v49  ;;  %v1645_v0 = vsel %vm1619_vm15, %v1637_v14, %v1618_v30 }
 0x390   :  { %v1669_v62 = vsel %vm1646_vm0, %v1652_v48, %v1642_v36  ;;  %v1670_v31 = vsel %vm1646_vm0, %v1656_v27, %v1643_v11  ;;  %v1671_v39 = vsel %vm1646_vm0, %v1660_v40, %v1644_v3  ;;  %v1672_v52 = vsel %vm1646_vm0, %v1664_v25, %v1645_v0 }
 0x391   :  { %v1677_v34 = vcombine.low %v1669_v62, %v1670_v31  ;;  %v1678_v45 = vcombine.low %v1671_v39, %v1672_v52 }
 0x393   :  { %1681 = vst [vmem:[#allocation15] sm:$0xff] %v1677_v34  ;;  %1682 = vst [vmem:[#allocation15 + $0x8] sm:$0xff] %v1678_v45 }
 0x394   :  { %1902 = shalt.err (!%p1899_p12)
}
 0x395   :  { %s1903_s3 = scalar_lea.hbm %s2771_s6, 256 }
 0x396   :  { %p1904_p13 = scmp.ne.s32.totalorder %s2771_s6, %s1903_s3  ;;  %p1907_p0 = scmp.lt.u32.totalorder %s1903_s3, %s2771_s6 }
 0x398   :  { %p1909_p1 = pnand %p1907_p0, %p1904_p13 }
 0x39a   :  { %1912 = shalt.err (!%p1909_p1)
}
 0x39b   :  { %1694 = dma.vmem_to_hbm [thread:$0]  %s1689_s27, 256, %s2771_s6, [#allocation5], %s1927_s11, %s1927_s11, %s1928_s12  }
 0x39c   :  { %1923 = dma.done.wait [#allocation5], 256  }
 0x39d   :  { %1924 = vsyncadd [#allocation5], 4294967040 }
 0x39e   :  { %1698 = vsyncpa [#allocation4], 1 }
 0x39f   :  { %1699 = vsyncpa [#allocation8], 1 }
 0x3a0   :  { %1700 = vsyncpa [#allocation5], 1 }
 0x3a1   :  { %1701 = vsyncpa [#allocation6], 1 }
 0x3a2   :  { %1702 = vsyncpa [#allocation11], 1 }
 0x3a3   :  { %1703 = vsyncpa [#allocation14], 1 }

</bundles_post_ra>
